<compile_context>
chip_gen: v7x
topology: tpu7x:2x2x1
jax: 0.10.0
libtpu: 0.0.40
codegen_flags: <defaults>
</compile_context>

<pallas_src>
import math

import jax
import jax.numpy as jnp
from jax.experimental import pallas as pl
from jax.experimental.pallas import tpu as pltpu

_EPS = 1e-5
_VMEM_LIMIT = 32 * 1024 * 1024   # explicit: v5e's default scoped limit is 16 MiB
_C1 = 64                         # conv1 output channels
_C2 = 128                        # conv2 output channels
_K = 5                           # kernel size (both convs), stride 2, pad 2


# ----------------------------------------------------------------------------
# Fused Pallas kernel: conv1 matmul -> conv2 (25 taps) -> BatchNorm
# ----------------------------------------------------------------------------
def _make_encoder_kernel(N, OH1, OW1, OH2, OW2):
    Hs = OH1 // 2 + 2          # phase-subgrid dims of the zero-padded conv1 out
    Ws = OW1 // 2 + 2
    blk_n = Hs * Ws            # rows per (phase, sample) in the phased layout
    blk_ph = N * blk_n         # rows per phase
    # Rows needed so that output (n, oh, ow) always sits at relative row
    # n*blk_n + oh*Ws + ow of every tap's slice.
    span = (N - 1) * blk_n + (OH2 - 1) * Ws + OW2

    def kernel(p1_ref, w1_ref, w2_ref, b2_ref, g_ref, bt_ref, y1pp_ref, y2_ref):
        # conv1: (R1, 76) @ (76, 64).  The bias lives in the last weight row
        # (valid patch rows carry a constant-1 column, padding rows are all
        # zero), so padding rows of the phased conv1 output are exactly 0.
        y1pp_ref[...] = jnp.dot(p1_ref[...], w1_ref[...],
                                preferred_element_type=jnp.float32)

        # conv2: accumulate the 25 taps.  For tap (kh, kw) the contiguous rows
        # [off, off + span) of the phased conv1 output are exactly the padded
        # inputs this tap needs, at fixed relative offsets.
        acc = jnp.zeros((span, _C2), jnp.float32)
        for kh in range(_K):
            for kw in range(_K):
                tap = kh * _K + kw
                off = (((kh % 2) * 2 + (kw % 2)) * blk_ph
                       + (kh // 2) * Ws + (kw // 2))
                lhs = y1pp_ref[off:off + span, :].astype(jnp.bfloat16)
                rhs = w2_ref[tap * _C1:(tap + 1) * _C1, :]
                acc = acc + jnp.dot(lhs, rhs, preferred_element_type=jnp.float32)

        # Gather the wanted rows (n, oh, ow) + bias into the conv2 output ref.
        for n in range(N):
            for oh in range(OH2):
                src = n * blk_n + oh * Ws
                dst = (n * OH2 + oh) * OW2
                y2_ref[dst:dst + OW2, :] = acc[src:src + OW2, :] + b2_ref[...]

        # BatchNorm, training mode (batch stats, biased variance), fused.
        y2 = y2_ref[...]
        mean = jnp.mean(y2, axis=0, keepdims=True)
        ctr = y2 - mean
        var = jnp.mean(ctr * ctr, axis=0, keepdims=True)
        y2_ref[...] = ctr * (jax.lax.rsqrt(var + _EPS) * g_ref[...]) + bt_ref[...]

    return kernel


# ----------------------------------------------------------------------------
# XLA glue: conv1 im2col + phase-decomposed row ordering (tiny)
# ----------------------------------------------------------------------------
def _im2col_conv1(x_nhwc):
    """im2col for conv1 (k=5, stride=2, pad=2); feature order (kh, kw, c)."""
    N, H, W, C = x_nhwc.shape
    OH = (H + 4 - _K) // 2 + 1
    OW = (W + 4 - _K) // 2 + 1
    xp = jnp.pad(x_nhwc, ((0, 0), (2, 2), (2, 2), (0, 0)))
    cols = []
    for kh in range(_K):
        for kw in range(_K):
            cols.append(xp[:, kh:kh + 2 * OH:2, kw:kw + 2 * OW:2, :])
    patches = jnp.stack(cols, axis=3).reshape(N, OH, OW, _K * _K * C)
    return patches, OH, OW


def encoder_forward(x_nchw, params):
    w1, b1, w2, b2, gamma, beta = params
    N, Cin, H, W = x_nchw.shape
    x = jnp.transpose(x_nchw, (0, 2, 3, 1)).astype(jnp.float32)      # NHWC

    patches, OH1, OW1 = _im2col_conv1(x)
    assert OH1 % 2 == 0 and OW1 % 2 == 0, "fused path assumes even conv1 output"
    OH2 = (OH1 + 4 - _K) // 2 + 1
    OW2 = (OW1 + 4 - _K) // 2 + 1
    Hs, Ws = OH1 // 2 + 2, OW1 // 2 + 2
    K1 = _K * _K * Cin
    R1 = 4 * N * Hs * Ws
    M2 = N * OH2 * OW2

    # Constant-1 column (bias folding) + re-order rows into the zero-padded,
    # phase-decomposed layout that the kernel's conv2 taps slice contiguously.
    patches = jnp.concatenate(
        [patches, jnp.ones((N, OH1, OW1, 1), jnp.float32)], axis=-1)
    pat = patches.reshape(N, OH1 // 2, 2, OW1 // 2, 2, K1 + 1)
    pat = jnp.transpose(pat, (2, 4, 0, 1, 3, 5))          # (ph, pw, n, hh, ww, f)
    p1 = jnp.zeros((2, 2, N, Hs, Ws, K1 + 1), jnp.float32)
    p1 = p1.at[:, :, :, 1:1 + OH1 // 2, 1:1 + OW1 // 2, :].set(pat)
    p1 = p1.reshape(R1, K1 + 1).astype(jnp.bfloat16)

    # Weights: (kh, kw, cin) row order to match the patch feature order.
    w1aug = jnp.concatenate(
        [jnp.transpose(w1, (2, 3, 1, 0)).reshape(K1, _C1), b1.reshape(1, _C1)],
        axis=0).astype(jnp.bfloat16)                       # (K1+1, 64)
    w2flat = jnp.transpose(w2, (2, 3, 1, 0)).reshape(_K * _K * _C1, _C2)
    w2flat = w2flat.astype(jnp.bfloat16)                   # (1600, 128)

    kernel = _make_encoder_kernel(N, OH1, OW1, OH2, OW2)
    span = (N - 1) * Hs * Ws + (OH2 - 1) * Ws + OW2
    cost = pl.CostEstimate(
        flops=2 * R1 * (K1 + 1) * _C1 + 2 * 25 * span * _C1 * _C2 + 10 * M2 * _C2,
        transcendentals=_C2,
        bytes_accessed=(2 * (p1.size + w1aug.size + w2flat.size)
                        + 4 * (R1 * _C1 + M2 * _C2 + 3 * _C2)),
    )
    vmem_spec = pl.BlockSpec(memory_space=pltpu.MemorySpace.VMEM)
    y1pp, y2 = pl.pallas_call(
        kernel,
        out_shape=(jax.ShapeDtypeStruct((R1, _C1), jnp.float32),
                   jax.ShapeDtypeStruct((M2, _C2), jnp.float32)),
        in_specs=[vmem_spec] * 6,
        out_specs=(vmem_spec, vmem_spec),
        compiler_params=pltpu.CompilerParams(vmem_limit_bytes=_VMEM_LIMIT),
        cost_estimate=cost,
    )(p1, w1aug, w2flat,
      b2.reshape(1, _C2), gamma.reshape(1, _C2), beta.reshape(1, _C2))

    # out1: extract the valid rows of the phased conv1 output; this slice /
    # transpose / reshape fuses with the mandatory NHWC->NCHW transpose in XLA.
    y1 = y1pp.reshape(2, 2, N, Hs, Ws, _C1)[:, :, :,
                                            1:1 + OH1 // 2, 1:1 + OW1 // 2, :]
    y1 = jnp.transpose(y1, (2, 3, 0, 4, 1, 5)).reshape(N, OH1, OW1, _C1)
    out1 = jnp.transpose(y1, (0, 3, 1, 2))

    out2 = jnp.transpose(y2.reshape(N, OH2, OW2, _C2), (0, 3, 1, 2))
    return out1, out2


# ----------------------------------------------------------------------------
# Params / reference / driver
# ----------------------------------------------------------------------------
def init_params(key):
    k1, k2 = jax.random.split(key)
    std1 = math.sqrt(2.0 / (3 * _K * _K))        # kaiming_normal_, fan_in
    std2 = math.sqrt(2.0 / (_C1 * _K * _K))
    w1 = jax.random.normal(k1, (_C1, 3, _K, _K), jnp.float32) * std1
    b1 = jnp.zeros((_C1,), jnp.float32)
    w2 = jax.random.normal(k2, (_C2, _C1, _K, _K), jnp.float32) * std2
    b2 = jnp.zeros((_C2,), jnp.float32)
    gamma = jnp.ones((_C2,), jnp.float32)
    beta = jnp.zeros((_C2,), jnp.float32)
    return (w1, b1, w2, b2, gamma, beta)


def _reference_forward(x_nchw, params):
    """Pure-XLA f32 (HIGHEST) reference of the PyTorch forward."""
    w1, b1, w2, b2, gamma, beta = params

    def conv(x, w, b):
        dn = jax.lax.conv_dimension_numbers(x.shape, w.shape,
                                            ("NCHW", "OIHW", "NCHW"))
        y = jax.lax.conv_general_dilated(
            x, w, window_strides=(2, 2), padding=((2, 2), (2, 2)),
            dimension_numbers=dn, precision=jax.lax.Precision.HIGHEST)
        return y + b[None, :, None, None]

    y1 = conv(x_nchw, w1, b1)
    y2 = conv(y1, w2, b2)
    mean = jnp.mean(y2, axis=(0, 2, 3), keepdims=True)
    ctr = y2 - mean
    var = jnp.mean(ctr * ctr, axis=(0, 2, 3), keepdims=True)
    y2n = (ctr * jax.lax.rsqrt(var + _EPS) * gamma[None, :, None, None]
           + beta[None, :, None, None])
    return y1, y2n


if __name__ == "__main__":
    key = jax.random.PRNGKey(0)
    kx, kp = jax.random.split(key)
    x = jax.random.normal(kx, (2, 3, 16, 16), jnp.float32)   # NCHW like PyTorch
    params = init_params(kp)

    out1, out2 = jax.jit(encoder_forward)(x, params)
    jax.block_until_ready((out1, out2))

    assert out1.shape == (2, 64, 8, 8), out1.shape
    assert out2.shape == (2, 128, 4, 4), out2.shape
    assert bool(jnp.all(jnp.isfinite(out1))) and bool(jnp.all(jnp.isfinite(out2)))

    # Numerical check vs an f32 HIGHEST reference (kernel runs the MXU with
    # bf16 operands / f32 accumulation, so a modest tolerance is expected).
    r1, r2 = _reference_forward(x, params)
    err1 = float(jnp.max(jnp.abs(out1 - r1)))
    err2 = float(jnp.max(jnp.abs(out2 - r2)))
    assert err1 < 1e-1, ("out1 mismatch", err1)
    assert err2 < 1e-1, ("out2 mismatch", err2)

    print("KERNEL_OK")
</pallas_src>

<mosaic_0001>
module attributes {stable_mosaic.version = 11 : i64} {
  func.func @kernel(%arg0: memref<288x76xbf16, #tpu.memory_space<vmem>>, %arg1: memref<76x64xbf16, #tpu.memory_space<vmem>>, %arg2: memref<1600x128xbf16, #tpu.memory_space<vmem>>, %arg3: memref<1x128xf32, #tpu.memory_space<vmem>>, %arg4: memref<1x128xf32, #tpu.memory_space<vmem>>, %arg5: memref<1x128xf32, #tpu.memory_space<vmem>>, %arg6: memref<288x64xf32, #tpu.memory_space<vmem>>, %arg7: memref<32x128xf32, #tpu.memory_space<vmem>>) attributes {dimension_semantics = [], scalar_prefetch = 0 : i64, scratch_operands = 0 : i64, tpu.core_type = #tpu.core_type<tc>} {
    %c0 = arith.constant 0 : index
    %c0_0 = arith.constant 0 : index
    %0 = vector.load %arg0[%c0, %c0_0] : memref<288x76xbf16, #tpu.memory_space<vmem>>, vector<288x76xbf16>
    %c0_1 = arith.constant 0 : index
    %c0_2 = arith.constant 0 : index
    %1 = vector.load %arg1[%c0_1, %c0_2] : memref<76x64xbf16, #tpu.memory_space<vmem>>, vector<76x64xbf16>
    %cst = arith.constant dense<0.000000e+00> : vector<288x64xf32>
    %2 = tpu.matmul %0, %1, %cst {dimension_numbers = #tpu.dot_dimension_numbers<[1], [0], [0], [1], [0, 0, 1, 1], [], []>} : vector<288x76xbf16>, vector<76x64xbf16>, vector<288x64xf32> -> vector<288x64xf32>
    %c0_3 = arith.constant 0 : index
    %c0_4 = arith.constant 0 : index
    %3 = vector.load %arg6[%c0_3, %c0_4] : memref<288x64xf32, #tpu.memory_space<vmem>>, vector<288x64xf32>
    tpu.vector_store %arg6[%c0_3, %c0_4], %2 {strides = array<i32>} : memref<288x64xf32, #tpu.memory_space<vmem>>, vector<288x64xf32>,
    %cst_5 = arith.constant 0.000000e+00 : f32
    %4 = vector.broadcast %cst_5 : f32 to vector<58x128xf32>
    %c0_6 = arith.constant 0 : index
    %c0_7 = arith.constant 0 : index
    %5 = vector.load %arg6[%c0_6, %c0_7] : memref<288x64xf32, #tpu.memory_space<vmem>>, vector<58x64xf32>
    %6 = arith.truncf %5 : vector<58x64xf32> to vector<58x64xbf16>
    %c0_8 = arith.constant 0 : index
    %c0_9 = arith.constant 0 : index
    %7 = vector.load %arg2[%c0_8, %c0_9] : memref<1600x128xbf16, #tpu.memory_space<vmem>>, vector<64x128xbf16>
    %cst_10 = arith.constant dense<0.000000e+00> : vector<58x128xf32>
    %8 = tpu.matmul %6, %7, %cst_10 {dimension_numbers = #tpu.dot_dimension_numbers<[1], [0], [0], [1], [0, 0, 1, 1], [], []>} : vector<58x64xbf16>, vector<64x128xbf16>, vector<58x128xf32> -> vector<58x128xf32>
    %9 = arith.addf %4, %8 : vector<58x128xf32>
    %c72 = arith.constant 72 : index
    %c0_11 = arith.constant 0 : index
    %10 = vector.load %arg6[%c72, %c0_11] : memref<288x64xf32, #tpu.memory_space<vmem>>, vector<58x64xf32>
    %11 = arith.truncf %10 : vector<58x64xf32> to vector<58x64xbf16>
    %c64 = arith.constant 64 : index
    %c0_12 = arith.constant 0 : index
    %12 = vector.load %arg2[%c64, %c0_12] : memref<1600x128xbf16, #tpu.memory_space<vmem>>, vector<64x128xbf16>
    %cst_13 = arith.constant dense<0.000000e+00> : vector<58x128xf32>
    %13 = tpu.matmul %11, %12, %cst_13 {dimension_numbers = #tpu.dot_dimension_numbers<[1], [0], [0], [1], [0, 0, 1, 1], [], []>} : vector<58x64xbf16>, vector<64x128xbf16>, vector<58x128xf32> -> vector<58x128xf32>
    %14 = arith.addf %9, %13 : vector<58x128xf32>
    %c1 = arith.constant 1 : index
    %c0_14 = arith.constant 0 : index
    %15 = vector.load %arg6[%c1, %c0_14] : memref<288x64xf32, #tpu.memory_space<vmem>>, vector<58x64xf32>
    %16 = arith.truncf %15 : vector<58x64xf32> to vector<58x64xbf16>
    %c128 = arith.constant 128 : index
    %c0_15 = arith.constant 0 : index
    %17 = vector.load %arg2[%c128, %c0_15] : memref<1600x128xbf16, #tpu.memory_space<vmem>>, vector<64x128xbf16>
    %cst_16 = arith.constant dense<0.000000e+00> : vector<58x128xf32>
    %18 = tpu.matmul %16, %17, %cst_16 {dimension_numbers = #tpu.dot_dimension_numbers<[1], [0], [0], [1], [0, 0, 1, 1], [], []>} : vector<58x64xbf16>, vector<64x128xbf16>, vector<58x128xf32> -> vector<58x128xf32>
    %19 = arith.addf %14, %18 : vector<58x128xf32>
    %c73 = arith.constant 73 : index
    %c0_17 = arith.constant 0 : index
    %20 = vector.load %arg6[%c73, %c0_17] : memref<288x64xf32, #tpu.memory_space<vmem>>, vector<58x64xf32>
    %21 = arith.truncf %20 : vector<58x64xf32> to vector<58x64xbf16>
    %c192 = arith.constant 192 : index
    %c0_18 = arith.constant 0 : index
    %22 = vector.load %arg2[%c192, %c0_18] : memref<1600x128xbf16, #tpu.memory_space<vmem>>, vector<64x128xbf16>
    %cst_19 = arith.constant dense<0.000000e+00> : vector<58x128xf32>
    %23 = tpu.matmul %21, %22, %cst_19 {dimension_numbers = #tpu.dot_dimension_numbers<[1], [0], [0], [1], [0, 0, 1, 1], [], []>} : vector<58x64xbf16>, vector<64x128xbf16>, vector<58x128xf32> -> vector<58x128xf32>
    %24 = arith.addf %19, %23 : vector<58x128xf32>
    %c2 = arith.constant 2 : index
    %c0_20 = arith.constant 0 : index
    %25 = vector.load %arg6[%c2, %c0_20] : memref<288x64xf32, #tpu.memory_space<vmem>>, vector<58x64xf32>
    %26 = arith.truncf %25 : vector<58x64xf32> to vector<58x64xbf16>
    %c256 = arith.constant 256 : index
    %c0_21 = arith.constant 0 : index
    %27 = vector.load %arg2[%c256, %c0_21] : memref<1600x128xbf16, #tpu.memory_space<vmem>>, vector<64x128xbf16>
    %cst_22 = arith.constant dense<0.000000e+00> : vector<58x128xf32>
    %28 = tpu.matmul %26, %27, %cst_22 {dimension_numbers = #tpu.dot_dimension_numbers<[1], [0], [0], [1], [0, 0, 1, 1], [], []>} : vector<58x64xbf16>, vector<64x128xbf16>, vector<58x128xf32> -> vector<58x128xf32>
    %29 = arith.addf %24, %28 : vector<58x128xf32>
    %c144 = arith.constant 144 : index
    %c0_23 = arith.constant 0 : index
    %30 = vector.load %arg6[%c144, %c0_23] : memref<288x64xf32, #tpu.memory_space<vmem>>, vector<58x64xf32>
    %31 = arith.truncf %30 : vector<58x64xf32> to vector<58x64xbf16>
    %c320 = arith.constant 320 : index
    %c0_24 = arith.constant 0 : index
    %32 = vector.load %arg2[%c320, %c0_24] : memref<1600x128xbf16, #tpu.memory_space<vmem>>, vector<64x128xbf16>
    %cst_25 = arith.constant dense<0.000000e+00> : vector<58x128xf32>
    %33 = tpu.matmul %31, %32, %cst_25 {dimension_numbers = #tpu.dot_dimension_numbers<[1], [0], [0], [1], [0, 0, 1, 1], [], []>} : vector<58x64xbf16>, vector<64x128xbf16>, vector<58x128xf32> -> vector<58x128xf32>
    %34 = arith.addf %29, %33 : vector<58x128xf32>
    %c216 = arith.constant 216 : index
    %c0_26 = arith.constant 0 : index
    %35 = vector.load %arg6[%c216, %c0_26] : memref<288x64xf32, #tpu.memory_space<vmem>>, vector<58x64xf32>
    %36 = arith.truncf %35 : vector<58x64xf32> to vector<58x64xbf16>
    %c384 = arith.constant 384 : index
    %c0_27 = arith.constant 0 : index
    %37 = vector.load %arg2[%c384, %c0_27] : memref<1600x128xbf16, #tpu.memory_space<vmem>>, vector<64x128xbf16>
    %cst_28 = arith.constant dense<0.000000e+00> : vector<58x128xf32>
    %38 = tpu.matmul %36, %37, %cst_28 {dimension_numbers = #tpu.dot_dimension_numbers<[1], [0], [0], [1], [0, 0, 1, 1], [], []>} : vector<58x64xbf16>, vector<64x128xbf16>, vector<58x128xf32> -> vector<58x128xf32>
    %39 = arith.addf %34, %38 : vector<58x128xf32>
    %c145 = arith.constant 145 : index
    %c0_29 = arith.constant 0 : index
    %40 = vector.load %arg6[%c145, %c0_29] : memref<288x64xf32, #tpu.memory_space<vmem>>, vector<58x64xf32>
    %41 = arith.truncf %40 : vector<58x64xf32> to vector<58x64xbf16>
    %c448 = arith.constant 448 : index
    %c0_30 = arith.constant 0 : index
    %42 = vector.load %arg2[%c448, %c0_30] : memref<1600x128xbf16, #tpu.memory_space<vmem>>, vector<64x128xbf16>
    %cst_31 = arith.constant dense<0.000000e+00> : vector<58x128xf32>
    %43 = tpu.matmul %41, %42, %cst_31 {dimension_numbers = #tpu.dot_dimension_numbers<[1], [0], [0], [1], [0, 0, 1, 1], [], []>} : vector<58x64xbf16>, vector<64x128xbf16>, vector<58x128xf32> -> vector<58x128xf32>
    %44 = arith.addf %39, %43 : vector<58x128xf32>
    %c217 = arith.constant 217 : index
    %c0_32 = arith.constant 0 : index
    %45 = vector.load %arg6[%c217, %c0_32] : memref<288x64xf32, #tpu.memory_space<vmem>>, vector<58x64xf32>
    %46 = arith.truncf %45 : vector<58x64xf32> to vector<58x64xbf16>
    %c512 = arith.constant 512 : index
    %c0_33 = arith.constant 0 : index
    %47 = vector.load %arg2[%c512, %c0_33] : memref<1600x128xbf16, #tpu.memory_space<vmem>>, vector<64x128xbf16>
    %cst_34 = arith.constant dense<0.000000e+00> : vector<58x128xf32>
    %48 = tpu.matmul %46, %47, %cst_34 {dimension_numbers = #tpu.dot_dimension_numbers<[1], [0], [0], [1], [0, 0, 1, 1], [], []>} : vector<58x64xbf16>, vector<64x128xbf16>, vector<58x128xf32> -> vector<58x128xf32>
    %49 = arith.addf %44, %48 : vector<58x128xf32>
    %c146 = arith.constant 146 : index
    %c0_35 = arith.constant 0 : index
    %50 = vector.load %arg6[%c146, %c0_35] : memref<288x64xf32, #tpu.memory_space<vmem>>, vector<58x64xf32>
    %51 = arith.truncf %50 : vector<58x64xf32> to vector<58x64xbf16>
    %c576 = arith.constant 576 : index
    %c0_36 = arith.constant 0 : index
    %52 = vector.load %arg2[%c576, %c0_36] : memref<1600x128xbf16, #tpu.memory_space<vmem>>, vector<64x128xbf16>
    %cst_37 = arith.constant dense<0.000000e+00> : vector<58x128xf32>
    %53 = tpu.matmul %51, %52, %cst_37 {dimension_numbers = #tpu.dot_dimension_numbers<[1], [0], [0], [1], [0, 0, 1, 1], [], []>} : vector<58x64xbf16>, vector<64x128xbf16>, vector<58x128xf32> -> vector<58x128xf32>
    %54 = arith.addf %49, %53 : vector<58x128xf32>
    %c6 = arith.constant 6 : index
    %c0_38 = arith.constant 0 : index
    %55 = vector.load %arg6[%c6, %c0_38] : memref<288x64xf32, #tpu.memory_space<vmem>>, vector<58x64xf32>
    %56 = arith.truncf %55 : vector<58x64xf32> to vector<58x64xbf16>
    %c640 = arith.constant 640 : index
    %c0_39 = arith.constant 0 : index
    %57 = vector.load %arg2[%c640, %c0_39] : memref<1600x128xbf16, #tpu.memory_space<vmem>>, vector<64x128xbf16>
    %cst_40 = arith.constant dense<0.000000e+00> : vector<58x128xf32>
    %58 = tpu.matmul %56, %57, %cst_40 {dimension_numbers = #tpu.dot_dimension_numbers<[1], [0], [0], [1], [0, 0, 1, 1], [], []>} : vector<58x64xbf16>, vector<64x128xbf16>, vector<58x128xf32> -> vector<58x128xf32>
    %59 = arith.addf %54, %58 : vector<58x128xf32>
    %c78 = arith.constant 78 : index
    %c0_41 = arith.constant 0 : index
    %60 = vector.load %arg6[%c78, %c0_41] : memref<288x64xf32, #tpu.memory_space<vmem>>, vector<58x64xf32>
    %61 = arith.truncf %60 : vector<58x64xf32> to vector<58x64xbf16>
    %c704 = arith.constant 704 : index
    %c0_42 = arith.constant 0 : index
    %62 = vector.load %arg2[%c704, %c0_42] : memref<1600x128xbf16, #tpu.memory_space<vmem>>, vector<64x128xbf16>
    %cst_43 = arith.constant dense<0.000000e+00> : vector<58x128xf32>
    %63 = tpu.matmul %61, %62, %cst_43 {dimension_numbers = #tpu.dot_dimension_numbers<[1], [0], [0], [1], [0, 0, 1, 1], [], []>} : vector<58x64xbf16>, vector<64x128xbf16>, vector<58x128xf32> -> vector<58x128xf32>
    %64 = arith.addf %59, %63 : vector<58x128xf32>
    %c7 = arith.constant 7 : index
    %c0_44 = arith.constant 0 : index
    %65 = vector.load %arg6[%c7, %c0_44] : memref<288x64xf32, #tpu.memory_space<vmem>>, vector<58x64xf32>
    %66 = arith.truncf %65 : vector<58x64xf32> to vector<58x64xbf16>
    %c768 = arith.constant 768 : index
    %c0_45 = arith.constant 0 : index
    %67 = vector.load %arg2[%c768, %c0_45] : memref<1600x128xbf16, #tpu.memory_space<vmem>>, vector<64x128xbf16>
    %cst_46 = arith.constant dense<0.000000e+00> : vector<58x128xf32>
    %68 = tpu.matmul %66, %67, %cst_46 {dimension_numbers = #tpu.dot_dimension_numbers<[1], [0], [0], [1], [0, 0, 1, 1], [], []>} : vector<58x64xbf16>, vector<64x128xbf16>, vector<58x128xf32> -> vector<58x128xf32>
    %69 = arith.addf %64, %68 : vector<58x128xf32>
    %c79 = arith.constant 79 : index
    %c0_47 = arith.constant 0 : index
    %70 = vector.load %arg6[%c79, %c0_47] : memref<288x64xf32, #tpu.memory_space<vmem>>, vector<58x64xf32>
    %71 = arith.truncf %70 : vector<58x64xf32> to vector<58x64xbf16>
    %c832 = arith.constant 832 : index
    %c0_48 = arith.constant 0 : index
    %72 = vector.load %arg2[%c832, %c0_48] : memref<1600x128xbf16, #tpu.memory_space<vmem>>, vector<64x128xbf16>
    %cst_49 = arith.constant dense<0.000000e+00> : vector<58x128xf32>
    %73 = tpu.matmul %71, %72, %cst_49 {dimension_numbers = #tpu.dot_dimension_numbers<[1], [0], [0], [1], [0, 0, 1, 1], [], []>} : vector<58x64xbf16>, vector<64x128xbf16>, vector<58x128xf32> -> vector<58x128xf32>
    %74 = arith.addf %69, %73 : vector<58x128xf32>
    %c8 = arith.constant 8 : index
    %c0_50 = arith.constant 0 : index
    %75 = vector.load %arg6[%c8, %c0_50] : memref<288x64xf32, #tpu.memory_space<vmem>>, vector<58x64xf32>
    %76 = arith.truncf %75 : vector<58x64xf32> to vector<58x64xbf16>
    %c896 = arith.constant 896 : index
    %c0_51 = arith.constant 0 : index
    %77 = vector.load %arg2[%c896, %c0_51] : memref<1600x128xbf16, #tpu.memory_space<vmem>>, vector<64x128xbf16>
    %cst_52 = arith.constant dense<0.000000e+00> : vector<58x128xf32>
    %78 = tpu.matmul %76, %77, %cst_52 {dimension_numbers = #tpu.dot_dimension_numbers<[1], [0], [0], [1], [0, 0, 1, 1], [], []>} : vector<58x64xbf16>, vector<64x128xbf16>, vector<58x128xf32> -> vector<58x128xf32>
    %79 = arith.addf %74, %78 : vector<58x128xf32>
    %c150 = arith.constant 150 : index
    %c0_53 = arith.constant 0 : index
    %80 = vector.load %arg6[%c150, %c0_53] : memref<288x64xf32, #tpu.memory_space<vmem>>, vector<58x64xf32>
    %81 = arith.truncf %80 : vector<58x64xf32> to vector<58x64xbf16>
    %c960 = arith.constant 960 : index
    %c0_54 = arith.constant 0 : index
    %82 = vector.load %arg2[%c960, %c0_54] : memref<1600x128xbf16, #tpu.memory_space<vmem>>, vector<64x128xbf16>
    %cst_55 = arith.constant dense<0.000000e+00> : vector<58x128xf32>
    %83 = tpu.matmul %81, %82, %cst_55 {dimension_numbers = #tpu.dot_dimension_numbers<[1], [0], [0], [1], [0, 0, 1, 1], [], []>} : vector<58x64xbf16>, vector<64x128xbf16>, vector<58x128xf32> -> vector<58x128xf32>
    %84 = arith.addf %79, %83 : vector<58x128xf32>
    %c222 = arith.constant 222 : index
    %c0_56 = arith.constant 0 : index
    %85 = vector.load %arg6[%c222, %c0_56] : memref<288x64xf32, #tpu.memory_space<vmem>>, vector<58x64xf32>
    %86 = arith.truncf %85 : vector<58x64xf32> to vector<58x64xbf16>
    %c1024 = arith.constant 1024 : index
    %c0_57 = arith.constant 0 : index
    %87 = vector.load %arg2[%c1024, %c0_57] : memref<1600x128xbf16, #tpu.memory_space<vmem>>, vector<64x128xbf16>
    %cst_58 = arith.constant dense<0.000000e+00> : vector<58x128xf32>
    %88 = tpu.matmul %86, %87, %cst_58 {dimension_numbers = #tpu.dot_dimension_numbers<[1], [0], [0], [1], [0, 0, 1, 1], [], []>} : vector<58x64xbf16>, vector<64x128xbf16>, vector<58x128xf32> -> vector<58x128xf32>
    %89 = arith.addf %84, %88 : vector<58x128xf32>
    %c151 = arith.constant 151 : index
    %c0_59 = arith.constant 0 : index
    %90 = vector.load %arg6[%c151, %c0_59] : memref<288x64xf32, #tpu.memory_space<vmem>>, vector<58x64xf32>
    %91 = arith.truncf %90 : vector<58x64xf32> to vector<58x64xbf16>
    %c1088 = arith.constant 1088 : index
    %c0_60 = arith.constant 0 : index
    %92 = vector.load %arg2[%c1088, %c0_60] : memref<1600x128xbf16, #tpu.memory_space<vmem>>, vector<64x128xbf16>
    %cst_61 = arith.constant dense<0.000000e+00> : vector<58x128xf32>
    %93 = tpu.matmul %91, %92, %cst_61 {dimension_numbers = #tpu.dot_dimension_numbers<[1], [0], [0], [1], [0, 0, 1, 1], [], []>} : vector<58x64xbf16>, vector<64x128xbf16>, vector<58x128xf32> -> vector<58x128xf32>
    %94 = arith.addf %89, %93 : vector<58x128xf32>
    %c223 = arith.constant 223 : index
    %c0_62 = arith.constant 0 : index
    %95 = vector.load %arg6[%c223, %c0_62] : memref<288x64xf32, #tpu.memory_space<vmem>>, vector<58x64xf32>
    %96 = arith.truncf %95 : vector<58x64xf32> to vector<58x64xbf16>
    %c1152 = arith.constant 1152 : index
    %c0_63 = arith.constant 0 : index
    %97 = vector.load %arg2[%c1152, %c0_63] : memref<1600x128xbf16, #tpu.memory_space<vmem>>, vector<64x128xbf16>
    %cst_64 = arith.constant dense<0.000000e+00> : vector<58x128xf32>
    %98 = tpu.matmul %96, %97, %cst_64 {dimension_numbers = #tpu.dot_dimension_numbers<[1], [0], [0], [1], [0, 0, 1, 1], [], []>} : vector<58x64xbf16>, vector<64x128xbf16>, vector<58x128xf32> -> vector<58x128xf32>
    %99 = arith.addf %94, %98 : vector<58x128xf32>
    %c152 = arith.constant 152 : index
    %c0_65 = arith.constant 0 : index
    %100 = vector.load %arg6[%c152, %c0_65] : memref<288x64xf32, #tpu.memory_space<vmem>>, vector<58x64xf32>
    %101 = arith.truncf %100 : vector<58x64xf32> to vector<58x64xbf16>
    %c1216 = arith.constant 1216 : index
    %c0_66 = arith.constant 0 : index
    %102 = vector.load %arg2[%c1216, %c0_66] : memref<1600x128xbf16, #tpu.memory_space<vmem>>, vector<64x128xbf16>
    %cst_67 = arith.constant dense<0.000000e+00> : vector<58x128xf32>
    %103 = tpu.matmul %101, %102, %cst_67 {dimension_numbers = #tpu.dot_dimension_numbers<[1], [0], [0], [1], [0, 0, 1, 1], [], []>} : vector<58x64xbf16>, vector<64x128xbf16>, vector<58x128xf32> -> vector<58x128xf32>
    %104 = arith.addf %99, %103 : vector<58x128xf32>
    %c12 = arith.constant 12 : index
    %c0_68 = arith.constant 0 : index
    %105 = vector.load %arg6[%c12, %c0_68] : memref<288x64xf32, #tpu.memory_space<vmem>>, vector<58x64xf32>
    %106 = arith.truncf %105 : vector<58x64xf32> to vector<58x64xbf16>
    %c1280 = arith.constant 1280 : index
    %c0_69 = arith.constant 0 : index
    %107 = vector.load %arg2[%c1280, %c0_69] : memref<1600x128xbf16, #tpu.memory_space<vmem>>, vector<64x128xbf16>
    %cst_70 = arith.constant dense<0.000000e+00> : vector<58x128xf32>
    %108 = tpu.matmul %106, %107, %cst_70 {dimension_numbers = #tpu.dot_dimension_numbers<[1], [0], [0], [1], [0, 0, 1, 1], [], []>} : vector<58x64xbf16>, vector<64x128xbf16>, vector<58x128xf32> -> vector<58x128xf32>
    %109 = arith.addf %104, %108 : vector<58x128xf32>
    %c84 = arith.constant 84 : index
    %c0_71 = arith.constant 0 : index
    %110 = vector.load %arg6[%c84, %c0_71] : memref<288x64xf32, #tpu.memory_space<vmem>>, vector<58x64xf32>
    %111 = arith.truncf %110 : vector<58x64xf32> to vector<58x64xbf16>
    %c1344 = arith.constant 1344 : index
    %c0_72 = arith.constant 0 : index
    %112 = vector.load %arg2[%c1344, %c0_72] : memref<1600x128xbf16, #tpu.memory_space<vmem>>, vector<64x128xbf16>
    %cst_73 = arith.constant dense<0.000000e+00> : vector<58x128xf32>
    %113 = tpu.matmul %111, %112, %cst_73 {dimension_numbers = #tpu.dot_dimension_numbers<[1], [0], [0], [1], [0, 0, 1, 1], [], []>} : vector<58x64xbf16>, vector<64x128xbf16>, vector<58x128xf32> -> vector<58x128xf32>
    %114 = arith.addf %109, %113 : vector<58x128xf32>
    %c13 = arith.constant 13 : index
    %c0_74 = arith.constant 0 : index
    %115 = vector.load %arg6[%c13, %c0_74] : memref<288x64xf32, #tpu.memory_space<vmem>>, vector<58x64xf32>
    %116 = arith.truncf %115 : vector<58x64xf32> to vector<58x64xbf16>
    %c1408 = arith.constant 1408 : index
    %c0_75 = arith.constant 0 : index
    %117 = vector.load %arg2[%c1408, %c0_75] : memref<1600x128xbf16, #tpu.memory_space<vmem>>, vector<64x128xbf16>
    %cst_76 = arith.constant dense<0.000000e+00> : vector<58x128xf32>
    %118 = tpu.matmul %116, %117, %cst_76 {dimension_numbers = #tpu.dot_dimension_numbers<[1], [0], [0], [1], [0, 0, 1, 1], [], []>} : vector<58x64xbf16>, vector<64x128xbf16>, vector<58x128xf32> -> vector<58x128xf32>
    %119 = arith.addf %114, %118 : vector<58x128xf32>
    %c85 = arith.constant 85 : index
    %c0_77 = arith.constant 0 : index
    %120 = vector.load %arg6[%c85, %c0_77] : memref<288x64xf32, #tpu.memory_space<vmem>>, vector<58x64xf32>
    %121 = arith.truncf %120 : vector<58x64xf32> to vector<58x64xbf16>
    %c1472 = arith.constant 1472 : index
    %c0_78 = arith.constant 0 : index
    %122 = vector.load %arg2[%c1472, %c0_78] : memref<1600x128xbf16, #tpu.memory_space<vmem>>, vector<64x128xbf16>
    %cst_79 = arith.constant dense<0.000000e+00> : vector<58x128xf32>
    %123 = tpu.matmul %121, %122, %cst_79 {dimension_numbers = #tpu.dot_dimension_numbers<[1], [0], [0], [1], [0, 0, 1, 1], [], []>} : vector<58x64xbf16>, vector<64x128xbf16>, vector<58x128xf32> -> vector<58x128xf32>
    %124 = arith.addf %119, %123 : vector<58x128xf32>
    %c14 = arith.constant 14 : index
    %c0_80 = arith.constant 0 : index
    %125 = vector.load %arg6[%c14, %c0_80] : memref<288x64xf32, #tpu.memory_space<vmem>>, vector<58x64xf32>
    %126 = arith.truncf %125 : vector<58x64xf32> to vector<58x64xbf16>
    %c1536 = arith.constant 1536 : index
    %c0_81 = arith.constant 0 : index
    %127 = vector.load %arg2[%c1536, %c0_81] : memref<1600x128xbf16, #tpu.memory_space<vmem>>, vector<64x128xbf16>
    %cst_82 = arith.constant dense<0.000000e+00> : vector<58x128xf32>
    %128 = tpu.matmul %126, %127, %cst_82 {dimension_numbers = #tpu.dot_dimension_numbers<[1], [0], [0], [1], [0, 0, 1, 1], [], []>} : vector<58x64xbf16>, vector<64x128xbf16>, vector<58x128xf32> -> vector<58x128xf32>
    %129 = arith.addf %124, %128 : vector<58x128xf32>
    %130 = vector.extract_strided_slice %129 {offsets = [0, 0], sizes = [4, 128], strides = [1, 1]} : vector<58x128xf32> to vector<4x128xf32>
    %c0_83 = arith.constant 0 : index
    %c0_84 = arith.constant 0 : index
    %131 = vector.load %arg3[%c0_83, %c0_84] : memref<1x128xf32, #tpu.memory_space<vmem>>, vector<1x128xf32>
    %132 = vector.broadcast %131 : vector<1x128xf32> to vector<4x128xf32>
    %133 = arith.addf %130, %132 : vector<4x128xf32>
    %c0_85 = arith.constant 0 : index
    %c0_86 = arith.constant 0 : index
    %134 = vector.load %arg7[%c0_85, %c0_86] : memref<32x128xf32, #tpu.memory_space<vmem>>, vector<4x128xf32>
    tpu.vector_store %arg7[%c0_85, %c0_86], %133 {strides = array<i32>} : memref<32x128xf32, #tpu.memory_space<vmem>>, vector<4x128xf32>,
    %135 = vector.extract_strided_slice %129 {offsets = [6, 0], sizes = [4, 128], strides = [1, 1]} : vector<58x128xf32> to vector<4x128xf32>
    %c0_87 = arith.constant 0 : index
    %c0_88 = arith.constant 0 : index
    %136 = vector.load %arg3[%c0_87, %c0_88] : memref<1x128xf32, #tpu.memory_space<vmem>>, vector<1x128xf32>
    %137 = vector.broadcast %136 : vector<1x128xf32> to vector<4x128xf32>
    %138 = arith.addf %135, %137 : vector<4x128xf32>
    %c4 = arith.constant 4 : index
    %c0_89 = arith.constant 0 : index
    %139 = vector.load %arg7[%c4, %c0_89] : memref<32x128xf32, #tpu.memory_space<vmem>>, vector<4x128xf32>
    tpu.vector_store %arg7[%c4, %c0_89], %138 {strides = array<i32>} : memref<32x128xf32, #tpu.memory_space<vmem>>, vector<4x128xf32>,
    %140 = vector.extract_strided_slice %129 {offsets = [12, 0], sizes = [4, 128], strides = [1, 1]} : vector<58x128xf32> to vector<4x128xf32>
    %c0_90 = arith.constant 0 : index
    %c0_91 = arith.constant 0 : index
    %141 = vector.load %arg3[%c0_90, %c0_91] : memref<1x128xf32, #tpu.memory_space<vmem>>, vector<1x128xf32>
    %142 = vector.broadcast %141 : vector<1x128xf32> to vector<4x128xf32>
    %143 = arith.addf %140, %142 : vector<4x128xf32>
    %c8_92 = arith.constant 8 : index
    %c0_93 = arith.constant 0 : index
    %144 = vector.load %arg7[%c8_92, %c0_93] : memref<32x128xf32, #tpu.memory_space<vmem>>, vector<4x128xf32>
    tpu.vector_store %arg7[%c8_92, %c0_93], %143 {strides = array<i32>} : memref<32x128xf32, #tpu.memory_space<vmem>>, vector<4x128xf32>,
    %145 = vector.extract_strided_slice %129 {offsets = [18, 0], sizes = [4, 128], strides = [1, 1]} : vector<58x128xf32> to vector<4x128xf32>
    %c0_94 = arith.constant 0 : index
    %c0_95 = arith.constant 0 : index
    %146 = vector.load %arg3[%c0_94, %c0_95] : memref<1x128xf32, #tpu.memory_space<vmem>>, vector<1x128xf32>
    %147 = vector.broadcast %146 : vector<1x128xf32> to vector<4x128xf32>
    %148 = arith.addf %145, %147 : vector<4x128xf32>
    %c12_96 = arith.constant 12 : index
    %c0_97 = arith.constant 0 : index
    %149 = vector.load %arg7[%c12_96, %c0_97] : memref<32x128xf32, #tpu.memory_space<vmem>>, vector<4x128xf32>
    tpu.vector_store %arg7[%c12_96, %c0_97], %148 {strides = array<i32>} : memref<32x128xf32, #tpu.memory_space<vmem>>, vector<4x128xf32>,
    %150 = vector.extract_strided_slice %129 {offsets = [36, 0], sizes = [4, 128], strides = [1, 1]} : vector<58x128xf32> to vector<4x128xf32>
    %c0_98 = arith.constant 0 : index
    %c0_99 = arith.constant 0 : index
    %151 = vector.load %arg3[%c0_98, %c0_99] : memref<1x128xf32, #tpu.memory_space<vmem>>, vector<1x128xf32>
    %152 = vector.broadcast %151 : vector<1x128xf32> to vector<4x128xf32>
    %153 = arith.addf %150, %152 : vector<4x128xf32>
    %c16 = arith.constant 16 : index
    %c0_100 = arith.constant 0 : index
    %154 = vector.load %arg7[%c16, %c0_100] : memref<32x128xf32, #tpu.memory_space<vmem>>, vector<4x128xf32>
    tpu.vector_store %arg7[%c16, %c0_100], %153 {strides = array<i32>} : memref<32x128xf32, #tpu.memory_space<vmem>>, vector<4x128xf32>,
    %155 = vector.extract_strided_slice %129 {offsets = [42, 0], sizes = [4, 128], strides = [1, 1]} : vector<58x128xf32> to vector<4x128xf32>
    %c0_101 = arith.constant 0 : index
    %c0_102 = arith.constant 0 : index
    %156 = vector.load %arg3[%c0_101, %c0_102] : memref<1x128xf32, #tpu.memory_space<vmem>>, vector<1x128xf32>
    %157 = vector.broadcast %156 : vector<1x128xf32> to vector<4x128xf32>
    %158 = arith.addf %155, %157 : vector<4x128xf32>
    %c20 = arith.constant 20 : index
    %c0_103 = arith.constant 0 : index
    %159 = vector.load %arg7[%c20, %c0_103] : memref<32x128xf32, #tpu.memory_space<vmem>>, vector<4x128xf32>
    tpu.vector_store %arg7[%c20, %c0_103], %158 {strides = array<i32>} : memref<32x128xf32, #tpu.memory_space<vmem>>, vector<4x128xf32>,
    %160 = vector.extract_strided_slice %129 {offsets = [48, 0], sizes = [4, 128], strides = [1, 1]} : vector<58x128xf32> to vector<4x128xf32>
    %c0_104 = arith.constant 0 : index
    %c0_105 = arith.constant 0 : index
    %161 = vector.load %arg3[%c0_104, %c0_105] : memref<1x128xf32, #tpu.memory_space<vmem>>, vector<1x128xf32>
    %162 = vector.broadcast %161 : vector<1x128xf32> to vector<4x128xf32>
    %163 = arith.addf %160, %162 : vector<4x128xf32>
    %c24 = arith.constant 24 : index
    %c0_106 = arith.constant 0 : index
    %164 = vector.load %arg7[%c24, %c0_106] : memref<32x128xf32, #tpu.memory_space<vmem>>, vector<4x128xf32>
    tpu.vector_store %arg7[%c24, %c0_106], %163 {strides = array<i32>} : memref<32x128xf32, #tpu.memory_space<vmem>>, vector<4x128xf32>,
    %165 = vector.extract_strided_slice %129 {offsets = [54, 0], sizes = [4, 128], strides = [1, 1]} : vector<58x128xf32> to vector<4x128xf32>
    %c0_107 = arith.constant 0 : index
    %c0_108 = arith.constant 0 : index
    %166 = vector.load %arg3[%c0_107, %c0_108] : memref<1x128xf32, #tpu.memory_space<vmem>>, vector<1x128xf32>
    %167 = vector.broadcast %166 : vector<1x128xf32> to vector<4x128xf32>
    %168 = arith.addf %165, %167 : vector<4x128xf32>
    %c28 = arith.constant 28 : index
    %c0_109 = arith.constant 0 : index
    %169 = vector.load %arg7[%c28, %c0_109] : memref<32x128xf32, #tpu.memory_space<vmem>>, vector<4x128xf32>
    tpu.vector_store %arg7[%c28, %c0_109], %168 {strides = array<i32>} : memref<32x128xf32, #tpu.memory_space<vmem>>, vector<4x128xf32>,
    %c0_110 = arith.constant 0 : index
    %c0_111 = arith.constant 0 : index
    %170 = vector.load %arg7[%c0_110, %c0_111] : memref<32x128xf32, #tpu.memory_space<vmem>>, vector<32x128xf32>
    %cst_112 = arith.constant dense<0.000000e+00> : vector<128xf32>
    %171 = vector.multi_reduction <add>, %170, %cst_112 [0] : vector<32x128xf32> to vector<128xf32>
    %172 = vector.shape_cast %171 : vector<128xf32> to vector<1x128xf32>
    %cst_113 = arith.constant 3.200000e+01 : f32
    %173 = vector.broadcast %cst_113 : f32 to vector<1x128xf32>
    %174 = arith.divf %172, %173 : vector<1x128xf32>
    %175 = vector.broadcast %174 : vector<1x128xf32> to vector<32x128xf32>
    %176 = arith.subf %170, %175 : vector<32x128xf32>
    %177 = arith.mulf %176, %176 : vector<32x128xf32>
    %cst_114 = arith.constant dense<0.000000e+00> : vector<128xf32>
    %178 = vector.multi_reduction <add>, %177, %cst_114 [0] : vector<32x128xf32> to vector<128xf32>
    %179 = vector.shape_cast %178 : vector<128xf32> to vector<1x128xf32>
    %cst_115 = arith.constant 3.200000e+01 : f32
    %180 = vector.broadcast %cst_115 : f32 to vector<1x128xf32>
    %181 = arith.divf %179, %180 : vector<1x128xf32>
    %cst_116 = arith.constant 9.99999974E-6 : f32
    %182 = vector.broadcast %cst_116 : f32 to vector<1x128xf32>
    %183 = arith.addf %181, %182 : vector<1x128xf32>
    %184 = math.rsqrt %183 : vector<1x128xf32>
    %c0_117 = arith.constant 0 : index
    %c0_118 = arith.constant 0 : index
    %185 = vector.load %arg4[%c0_117, %c0_118] : memref<1x128xf32, #tpu.memory_space<vmem>>, vector<1x128xf32>
    %186 = arith.mulf %184, %185 : vector<1x128xf32>
    %187 = vector.broadcast %186 : vector<1x128xf32> to vector<32x128xf32>
    %188 = arith.mulf %176, %187 : vector<32x128xf32>
    %c0_119 = arith.constant 0 : index
    %c0_120 = arith.constant 0 : index
    %189 = vector.load %arg5[%c0_119, %c0_120] : memref<1x128xf32, #tpu.memory_space<vmem>>, vector<1x128xf32>
    %190 = vector.broadcast %189 : vector<1x128xf32> to vector<32x128xf32>
    %191 = arith.addf %188, %190 : vector<32x128xf32>
    %c0_121 = arith.constant 0 : index
    %c0_122 = arith.constant 0 : index
    %192 = vector.load %arg7[%c0_121, %c0_122] : memref<32x128xf32, #tpu.memory_space<vmem>>, vector<32x128xf32>
    tpu.vector_store %arg7[%c0_121, %c0_122], %191 {strides = array<i32>} : memref<32x128xf32, #tpu.memory_space<vmem>>, vector<32x128xf32>,
    return
  }
}

</mosaic_0001>

<bundles_post_ra>
// kernel: encoder_forward.1
= control target key start
LH: loop header
LB: loop body
LE: loop exit
PB: predicated region body
PF: predicated region fallthrough
CT: control target
= control target key end

     0   :  { %vm192_vm0 = vcmask 621568   ;;  %vm247_vm1 = vcmask 1045504   ;;  %s6342_s0 = inlined_call_operand.vmem [shape: bf16[288,76], index: 0, kind: input, shape index: {}]   ;;  %s6343_s1 = inlined_call_operand.vmem [shape: bf16[76,64], index: 1, kind: input, shape index: {}]   ;;  %s6344_s2 = inlined_call_operand.vmem [shape: bf16[1600,128], index: 2, kind: input, shape index: {}]   ;;  %s6345_s3 = inlined_call_operand.vmem [shape: f32[1,128], index: 3, kind: input, shape index: {}]   ;;  %s6346_s4 = inlined_call_operand.vmem [shape: f32[1,128], index: 4, kind: input, shape index: {}]   ;;  %s6347_s5 = inlined_call_operand.vmem [shape: f32[1,128], index: 5, kind: input, shape index: {}]   ;;  %s6348_s6 = inlined_call_operand.vmem [shape: f32[288,64], index: 6, kind: output, shape index: {0}]   ;;  %s6349_s7 = inlined_call_operand.hbm [shape: f32[32,128], index: 7, kind: output, shape index: {1}]  }
   0x1   :  { %v4801_v0 = vld [vmem:[%s6343_s1] sm:$0xff]   ;;  %v4802_v1 = vld [vmem:[%s6343_s1 + $0x8] sm:$0xff]   ;;  %v4803_v2 = vld [vmem:[%s6343_s1 + $0x10] sm:$0xff]  }
   0x2   :  { %4255 = vmatprep.subr.bf16.mxu0 %v4801_v0  ;;  %v4806_v3 = vld [vmem:[%s6342_s0] sm:$0xff]   ;;  %v4804_v4 = vld [vmem:[%s6343_s1 + $0x18] sm:$0xff]   ;;  %v4807_v7 = vld [vmem:[%s6342_s0 + $0x8] sm:$0xff]  }
   0x3   :  { %4256 = vmatpush3.bf16.msra.mxu0 %v4801_v0  ;;  %4265 = vmatprep.mubr.msk.bf16.mxu0 %vm192_vm0, %v4806_v3  ;;  %v4805_v5 = vld [vmem:[%s6343_s1 + $0x20] sm:$0x3f]   ;;  %v4808_v8 = vld [vmem:[%s6342_s0 + $0x10] sm:$0xff]   ;;  %v4809_v9 = vld [vmem:[%s6342_s0 + $0x18] sm:$0xff]  }
   0x4   :  { %4257 = vmatprep.subr.bf16.mxu0 %v4802_v1  ;;  %v249_v6 = vsel %vm247_vm1, %v4805_v5, 0  ;;  %v4810_v10 = vld [vmem:[%s6342_s0 + $0x20] sm:$0xff]   ;;  %v4811_v11 = vld [vmem:[%s6342_s0 + $0x28] sm:$0xff]   ;;  %v4812_v12 = vld [vmem:[%s6342_s0 + $0x30] sm:$0xff]  }
   0x5   :  { %v4813_v13 = vld [vmem:[%s6342_s0 + $0x38] sm:$0xff]   ;;  %v4814_v14 = vld [vmem:[%s6342_s0 + $0x40] sm:$0xff]   ;;  %v4815_v15 = vld [vmem:[%s6342_s0 + $0x48] sm:$0xff]  }
   0x6   :  { %v4816_v16 = vld [vmem:[%s6342_s0 + $0x50] sm:$0xff]   ;;  %v4817_v17 = vld [vmem:[%s6342_s0 + $0x58] sm:$0xff]   ;;  %v4818_v18 = vld [vmem:[%s6342_s0 + $0x60] sm:$0xff]  }
   0x7   :  { %4258 = vmatpush3.bf16.msra.mxu0 %v4802_v1  ;;  %v4819_v19 = vld [vmem:[%s6342_s0 + $0x68] sm:$0xff]   ;;  %v4820_v20 = vld [vmem:[%s6342_s0 + $0x70] sm:$0xff]   ;;  %v4821_v21 = vld [vmem:[%s6342_s0 + $0x78] sm:$0xff]  }
   0x8   :  { %4259 = vmatprep.subr.bf16.mxu0 %v4803_v2  ;;  %v4822_v22 = vld [vmem:[%s6342_s0 + $0x80] sm:$0xff]   ;;  %v4823_v23 = vld [vmem:[%s6342_s0 + $0x88] sm:$0xff]  }
   0xb   :  { %4260 = vmatpush3.bf16.msra.mxu0 %v4803_v2 }
   0xc   :  { %4261 = vmatprep.subr.bf16.mxu0 %v4804_v4 }
   0xf   :  { %4262 = vmatpush3.bf16.msra.mxu0 %v4804_v4 }
  0x10   :  { %4797 = vmatprep.subr.msk.bf16.mxu0 %vm247_vm1, %v4805_v5 }
  0x13   :  { %4264 = vmatpush3.bf16.msra.mxu0 %v249_v6 }
  0x16   :  { %4266 = vmatmul.mubr.msk.bf16.vlgmr.msra.gmra.mrb[0].mxu0 %vm192_vm0, %v4807_v7 }
  0x17   :  { %4269 = vmatprep.mubr.msk.bf16.mxu0 %vm192_vm0, %v4808_v8 }
  0x1e   :  { %4270 = vmatmul.mubr.msk.bf16.gmra.mrb[4].mxu0 %vm192_vm0, %v4809_v9 }
  0x1f   :  { %4273 = vmatprep.mubr.msk.bf16.mxu0 %vm192_vm0, %v4810_v10 }
  0x26   :  { %4274 = vmatmul.mubr.msk.bf16.gmra.mrb[8].mxu0 %vm192_vm0, %v4811_v11 }
  0x27   :  { %4277 = vmatprep.mubr.msk.bf16.mxu0 %vm192_vm0, %v4812_v12 }
  0x2e   :  { %4278 = vmatmul.mubr.msk.bf16.gmra.mrb[12].mxu0 %vm192_vm0, %v4813_v13 }
  0x2f   :  { %4281 = vmatprep.mubr.msk.bf16.mxu0 %vm192_vm0, %v4814_v14 }
  0x36   :  { %4282 = vmatmul.mubr.msk.bf16.gmra.mrb[16].mxu0 %vm192_vm0, %v4815_v15 }
  0x37   :  { %4285 = vmatprep.mubr.msk.bf16.mxu0 %vm192_vm0, %v4816_v16 }
  0x3e   :  { %4286 = vmatmul.mubr.msk.bf16.gmra.mrb[20].mxu0 %vm192_vm0, %v4817_v17 }
  0x3f   :  { %4289 = vmatprep.mubr.msk.bf16.mxu0 %vm192_vm0, %v4818_v18 }
  0x46   :  { %4290 = vmatmul.mubr.msk.bf16.gmra.mrb[24].mxu0 %vm192_vm0, %v4819_v19 }
  0x47   :  { %4293 = vmatprep.mubr.msk.bf16.mxu0 %vm192_vm0, %v4820_v20 }
  0x4e   :  { %4294 = vmatmul.mubr.msk.bf16.gmra.mrb[28].mxu0 %vm192_vm0, %v4821_v21 }
  0x4f   :  { %4297 = vmatprep.mubr.msk.bf16.mxu0 %vm192_vm0, %v4822_v22 }
  0x56   :  { %4298 = vmatmul.mubr.msk.bf16.gmra.mrb[32].mxu0 %vm192_vm0, %v4823_v23 }
  0x57   :  { %13 = vsyncpa [#allocation3], 0  ;;  %v4824_v24 = vld [vmem:[%s6344_s2 + $0x140] sm:$0xff]   ;;  %v4826_v26 = vld [vmem:[%s6344_s2 + $0x148] sm:$0xff]   ;;  %vm428_vm2 = vcmask 523264   ;;  %s4950_s23 = smov [#allocation2]  }
  0x58   :  { %4461 = vmatprep.subr.bf16.mxu1 %v4824_v24  ;;  %v4825_v25 = vld [vmem:[%s6344_s2 + $0x20] sm:$0xff]   ;;  %v4827_v27 = vld [vmem:[%s6344_s2 + $0x150] sm:$0xff]   ;;  %v4828_v28 = vld [vmem:[%s6344_s2 + $0x158] sm:$0xff]   ;;  %s3769_s24 = sshll.u32 %s4950_s23, 4  ;;  %s3770_s24 = int_to_ptr.vmem [resolvable:$true] %s3769_s24 }
  0x59   :  { %4462 = vmatpush3.bf16.msra.mxu1 %v4824_v24  ;;  %4301 = vmatprep.subr.bf16.mxu0 %v4825_v25  ;;  %v4829_v29 = vld [vmem:[%s6344_s2 + $0x160] sm:$0xff]   ;;  %v4830_v30 = vld [vmem:[%s6344_s2 + $0x28] sm:$0xff]   ;;  %v4832_v31 = vld [vmem:[%s6344_s2 + $0x30] sm:$0xff]   ;;  %p4931_p1 = scmp.lt.s32.totalorder %s3770_s24, %s3770_s24 }
  0x5a   :  { %4302 = vmatpush3.bf16.msra.mxu0 %v4825_v25  ;;  %4463 = vmatprep.subr.bf16.mxu1 %v4826_v26  ;;  %v4834_v32 = vld [vmem:[%s6344_s2 + $0x38] sm:$0xff]   ;;  %v5110_v33 = vld [vmem:[%s6344_s2] sm:$0xff]   ;;  %v4831_v51 = vld [vmem:[%s6344_s2 + $0x168] sm:$0xff]  }
  0x5b   :  { %4303 = vmatprep.subr.bf16.mxu0 %v4830_v30  ;;  %v4833_v56 = vld [vmem:[%s6344_s2 + $0x170] sm:$0xff]   ;;  %v4835_v0 = vld [vmem:[%s6344_s2 + $0x178] sm:$0xff]   ;;  %v4837_v7 = vld [vmem:[%s6344_s2 + $0x180] sm:$0xff]  }
  0x5c   :  { %v4838_v24 = vld [vmem:[%s6344_s2 + $0x8] sm:$0xff]  }
  0x5d   :  { %4464 = vmatpush3.bf16.msra.mxu1 %v4826_v26  ;;  %v4839_v25 = vld [vmem:[%s6344_s2 + $0x188] sm:$0xff]   ;;  %v4840_v26 = vld [vmem:[%s6344_s2 + $0x10] sm:$0xff]  }
  0x5e   :  { %4465 = vmatprep.subr.bf16.mxu1 %v4827_v27  ;;  %4304 = vmatpush3.bf16.msra.mxu0 %v4830_v30 }
  0x5f   :  { %4305 = vmatprep.subr.bf16.mxu0 %v4832_v31 }
  0x61   :  { %4466 = vmatpush3.bf16.msra.mxu1 %v4827_v27  ;;  %v4841_v27 = vld [vmem:[%s6344_s2 + $0x190] sm:$0xff]  }
  0x62   :  { %4467 = vmatprep.subr.bf16.mxu1 %v4828_v28  ;;  %4306 = vmatpush3.bf16.msra.mxu0 %v4832_v31  ;;  %v4842_v31 = vld [vmem:[%s6344_s2 + $0x18] sm:$0xff]  }
  0x63   :  { %4307 = vmatprep.subr.bf16.mxu0 %v4834_v32 }
  0x65   :  { %4468 = vmatpush3.bf16.msra.mxu1 %v4828_v28 }
  0x66   :  { %4477 = vmatprep.subr.bf16.mxu1 %v4829_v29  ;;  %4308 = vmatpush3.bf16.msra.mxu0 %v4834_v32 }
  0x67   :  { %4317 = vmatprep.subr.bf16.mxu0 %v5110_v33 }
  0xe9   :  { %v4267_v34 = vpop.f32.mrb[0].mxu0 }
  0xea   :  { %431 = vst.msk [vmem:[%s6348_s6 + $0x10] sm:$0xff] %vm428_vm2, %v4267_v34  ;;  %v285_v35 = vpop.f32.mrb[1].mxu0 }
  0xeb   :  { %429 = vst.msk [vmem:[%s6348_s6] sm:$0xff] %vm428_vm2, %v285_v35  ;;  %v4268_v36 = vpop.f32.mrb[2].mxu0 }
  0xec   :  { %432 = vst.msk [vmem:[%s6348_s6 + $0x18] sm:$0xff] %vm428_vm2, %v4268_v36  ;;  %v288_v37 = vpop.f32.mrb[3].mxu0 }
  0xed   :  { %430 = vst.msk [vmem:[%s6348_s6 + $0x8] sm:$0xff] %vm428_vm2, %v288_v37 }
  0xf1   :  { %v4271_v38 = vpop.f32.mrb[4].mxu0 }
  0xf2   :  { %435 = vst.msk [vmem:[%s6348_s6 + $0x30] sm:$0xff] %vm428_vm2, %v4271_v38  ;;  %v301_v39 = vpop.f32.mrb[5].mxu0  ;;  %v465_v37 = vld [vmem:[%s6348_s6] sm:$0xff] }
  0xf3   :  { %433 = vst.msk [vmem:[%s6348_s6 + $0x20] sm:$0xff] %vm428_vm2, %v301_v39  ;;  %v4272_v40 = vpop.f32.mrb[6].mxu0  ;;  %v1723_v47 = vld [vmem:[%s6348_s6 + $0x16] sm:$0xff] }
  0xf4   :  { %436 = vst.msk [vmem:[%s6348_s6 + $0x38] sm:$0xff] %vm428_vm2, %v4272_v40  ;;  %v304_v41 = vpop.f32.mrb[7].mxu0  ;;  %v1721_v42 = vld [vmem:[%s6348_s6 + $0x6] sm:$0xff]  ;;  %v1722_v43 = vld [vmem:[%s6348_s6 + $0xe] sm:$0xff] }
  0xf5   :  { %434 = vst.msk [vmem:[%s6348_s6 + $0x28] sm:$0xff] %vm428_vm2, %v304_v41  ;;  %v1729_v44 = vpack.c.bf16 %v1722_v43, %v1721_v42  ;;  %v5294_v30 = vld [vmem:[%s6348_s6 + $0x8] sm:$0xff] }
  0xf6   :  { %v1975_v38 = vld [vmem:[%s6348_s6 + $0x7] sm:$0xff]  ;;  %v1976_v39 = vld [vmem:[%s6348_s6 + $0xf] sm:$0xff]  ;;  %v473_v41 = vpack.c.bf16 %v5294_v30, %v465_v37 }
  0xf7   :  { %4469 = vmatprep.mubr.msk.bf16.mxu1 %vm428_vm2, %v1729_v44  ;;  %v4843_v44 = vld [vmem:[%s6344_s2 + $0x198] sm:$0xff]  }
  0xf9   :  { %v4275_v45 = vpop.f32.mrb[8].mxu0 }
  0xfa   :  { %439 = vst.msk [vmem:[%s6348_s6 + $0x50] sm:$0xff] %vm428_vm2, %v4275_v45  ;;  %v317_v46 = vpop.f32.mrb[9].mxu0  ;;  %v1724_v48 = vld [vmem:[%s6348_s6 + $0x1e] sm:$0xff]  ;;  %v1983_v45 = vpack.c.bf16 %v1976_v39, %v1975_v38 }
  0xfb   :  { %437 = vst.msk [vmem:[%s6348_s6 + $0x40] sm:$0xff] %vm428_vm2, %v317_v46  ;;  %v4276_v49 = vpop.f32.mrb[10].mxu0  ;;  %v1730_v50 = vpack.c.bf16 %v1724_v48, %v1723_v47  ;;  %v1727_v57 = vld [vmem:[%s6348_s6 + $0x36] sm:$0xff]  ;;  %v1728_v58 = vld [vmem:[%s6348_s6 + $0x3e] sm:$0x3]  ;;  %v4844_v46 = vld [vmem:[%s6344_s2 + $0x40] sm:$0xff]  }
  0xfc   :  { %440 = vst.msk [vmem:[%s6348_s6 + $0x58] sm:$0xff] %vm428_vm2, %v4276_v49  ;;  %v320_v52 = vpop.f32.mrb[11].mxu0  ;;  %v1725_v53 = vld [vmem:[%s6348_s6 + $0x26] sm:$0xff]  ;;  %v1726_v54 = vld [vmem:[%s6348_s6 + $0x2e] sm:$0xff]  ;;  %v1732_v62 = vpack.c.bf16 %v1728_v58, %v1727_v57  ;;  %v5347_v47 = vld [vmem:[%s6348_s6 + $0x18] sm:$0xff] }
  0xfd   :  { %438 = vst.msk [vmem:[%s6348_s6 + $0x48] sm:$0xff] %vm428_vm2, %v320_v52  ;;  %4470 = vmatmul.mubr.msk.bf16.vlgmr.msra.gmra.mrb[0].mxu1 %vm428_vm2, %v1730_v50  ;;  %v1731_v55 = vpack.c.bf16 %v1726_v54, %v1725_v53  ;;  %v5352_v48 = vld [vmem:[%s6348_s6 + $0x28] sm:$0xff]  ;;  %v4845_v49 = vld [vmem:[%s6344_s2 + $0x1a0] sm:$0xff]  }
  0xfe   :  { %4478 = vmatpush3.bf16.msra.mxu1 %v4829_v29  ;;  %v1978_v52 = vld [vmem:[%s6348_s6 + $0x1f] sm:$0xff]  ;;  %v4846_v53 = vld [vmem:[%s6344_s2 + $0x48] sm:$0xff]  }
  0xff   :  { %4473 = vmatprep.mubr.msk.bf16.mxu1 %vm428_vm2, %v1731_v55  ;;  %4479 = vmatprep.subr.bf16.mxu1 %v4831_v51  ;;  %v1979_v57 = vld [vmem:[%s6348_s6 + $0x27] sm:$0xff]  ;;  %v1980_v58 = vld [vmem:[%s6348_s6 + $0x2f] sm:$0xff] }
 0x101   :  { %v4279_v59 = vpop.f32.mrb[12].mxu0  ;;  %v486_v3 = vld [vmem:[%s6348_s6 + $0x50] sm:$0xff] }
 0x102   :  { %443 = vst.msk [vmem:[%s6348_s6 + $0x70] sm:$0xff] %vm428_vm2, %v4279_v59  ;;  %v333_v60 = vpop.f32.mrb[13].mxu0  ;;  %4480 = vmatpush3.bf16.msra.mxu1 %v4831_v51  ;;  %v5360_v51 = vld [vmem:[%s6348_s6 + $0x10] sm:$0xff] }
 0x103   :  { %441 = vst.msk [vmem:[%s6348_s6 + $0x60] sm:$0xff] %vm428_vm2, %v333_v60  ;;  %v4280_v61 = vpop.f32.mrb[14].mxu0  ;;  %4481 = vmatprep.subr.bf16.mxu1 %v4833_v56  ;;  %v1849_v63 = vld [vmem:[%s6348_s6 + $0x56] sm:$0xff]  ;;  %v474_v55 = vpack.c.bf16 %v5347_v47, %v5360_v51 }
 0x104   :  { %444 = vst.msk [vmem:[%s6348_s6 + $0x78] sm:$0xff] %vm428_vm2, %v4280_v61  ;;  %v336_v1 = vpop.f32.mrb[15].mxu0  ;;  %v485_v2 = vld [vmem:[%s6348_s6 + $0x48] sm:$0xff]  ;;  %v487_v10 = vld [vmem:[%s6348_s6 + $0x58] sm:$0xff] }
 0x105   :  { %v1848_v4 = vld [vmem:[%s6348_s6 + $0x4e] sm:$0xff]  ;;  %442 = vst.msk [vmem:[%s6348_s6 + $0x68] sm:$0xff] %vm428_vm2, %v336_v1  ;;  %4474 = vmatmul.mubr.msk.bf16.gmra.mrb[4].mxu1 %vm428_vm2, %v1732_v62  ;;  %v493_v5 = vpack.c.bf16 %v486_v3, %v485_v2  ;;  %v1977_v61 = vld [vmem:[%s6348_s6 + $0x17] sm:$0xff]  ;;  %v1985_v1 = vpack.c.bf16 %v1980_v58, %v1979_v57 }
 0x106   :  { %v1856_v6 = vpack.c.bf16 %v1849_v63, %v1848_v4  ;;  %4482 = vmatpush3.bf16.msra.mxu1 %v4833_v56  ;;  %v5377_v56 = vld [vmem:[%s6348_s6 + $0x20] sm:$0xff]  ;;  %v1984_v63 = vpack.c.bf16 %v1978_v52, %v1977_v61  ;;  %v4848_v2 = vld [vmem:[%s6344_s2 + $0x50] sm:$0xff]   ;;  %v472_v3 = vld [vmem:[%s6348_s6 + $0x38] sm:$0x3] }
 0x107   :  { %4309 = vmatprep.mubr.msk.bf16.mxu0 %vm428_vm2, %v493_v5  ;;  %4483 = vmatprep.subr.bf16.mxu1 %v4835_v0  ;;  %v475_v60 = vpack.c.bf16 %v5352_v48, %v5377_v56  ;;  %v705_v4 = vld [vmem:[%s6348_s6 + $0x1] sm:$0xff]  ;;  %v706_v5 = vld [vmem:[%s6348_s6 + $0x9] sm:$0xff] }
 0x108   :  { %4485 = vmatprep.mubr.msk.bf16.mxu1 %vm428_vm2, %v1856_v6  ;;  %v4849_v6 = vld [vmem:[%s6344_s2 + $0x1b0] sm:$0xff]   ;;  %v4860_v61 = vld [vmem:[%s6344_s2 + $0x80] sm:$0xff]  }
 0x109   :  { %v4283_v8 = vpop.f32.mrb[16].mxu0  ;;  %v490_v14 = vld [vmem:[%s6348_s6 + $0x70] sm:$0xff] }
 0x10a   :  { %447 = vst.msk [vmem:[%s6348_s6 + $0x90] sm:$0xff] %vm428_vm2, %v4283_v8  ;;  %v349_v9 = vpop.f32.mrb[17].mxu0  ;;  %4484 = vmatpush3.bf16.msra.mxu1 %v4835_v0  ;;  %v488_v11 = vld [vmem:[%s6348_s6 + $0x60] sm:$0xff]  ;;  %v4847_v0 = vld [vmem:[%s6344_s2 + $0x1a8] sm:$0xff]   ;;  %v5427_v8 = vld [vmem:[%s6348_s6 + $0x30] sm:$0xff] }
 0x10b   :  { %445 = vst.msk [vmem:[%s6348_s6 + $0x80] sm:$0xff] %vm428_vm2, %v349_v9  ;;  %v4284_v12 = vpop.f32.mrb[18].mxu0  ;;  %v494_v13 = vpack.c.bf16 %v488_v11, %v487_v10  ;;  %4493 = vmatprep.subr.bf16.mxu1 %v4837_v7  ;;  %v1850_v15 = vld [vmem:[%s6348_s6 + $0x5e] sm:$0xff]  ;;  %v1853_v16 = vld [vmem:[%s6348_s6 + $0x76] sm:$0xff]  ;;  %v476_v11 = vpack.c.bf16 %v472_v3, %v5427_v8 }
 0x10c   :  { %448 = vst.msk [vmem:[%s6348_s6 + $0x98] sm:$0xff] %vm428_vm2, %v4284_v12  ;;  %v352_v17 = vpop.f32.mrb[19].mxu0  ;;  %v489_v18 = vld [vmem:[%s6348_s6 + $0x68] sm:$0xff]  ;;  %v491_v29 = vld [vmem:[%s6348_s6 + $0x78] sm:$0xff] }
 0x10d   :  { %v1851_v19 = vld [vmem:[%s6348_s6 + $0x66] sm:$0xff]  ;;  %v1852_v20 = vld [vmem:[%s6348_s6 + $0x6e] sm:$0xff]  ;;  %446 = vst.msk [vmem:[%s6348_s6 + $0x88] sm:$0xff] %vm428_vm2, %v352_v17  ;;  %4310 = vmatmul.mubr.msk.bf16.vlgmr.msra.gmra.mrb[36].mxu0 %vm428_vm2, %v494_v13  ;;  %v495_v21 = vpack.c.bf16 %v490_v14, %v489_v18  ;;  %v1982_v9 = vld [vmem:[%s6348_s6 + $0x3f] sm:$0x3] }
 0x10e   :  { %v1857_v22 = vpack.c.bf16 %v1851_v19, %v1850_v15  ;;  %v1858_v23 = vpack.c.bf16 %v1853_v16, %v1852_v20  ;;  %4318 = vmatpush3.bf16.msra.mxu0 %v5110_v33  ;;  %v2102_v12 = vld [vmem:[%s6348_s6 + $0x4f] sm:$0xff]  ;;  %v2103_v13 = vld [vmem:[%s6348_s6 + $0x57] sm:$0xff]  ;;  %v713_v16 = vpack.c.bf16 %v706_v5, %v705_v4  ;;  %v2104_v38 = vld [vmem:[%s6348_s6 + $0x5f] sm:$0xff]  ;;  %v2238_v4 = vpack.c.bf16 %v5377_v56, %v5347_v47 }
 0x10f   :  { %4313 = vmatprep.mubr.msk.bf16.mxu0 %vm428_vm2, %v495_v21  ;;  %4319 = vmatprep.subr.bf16.mxu0 %v4838_v24  ;;  %v4850_v14 = vld [vmem:[%s6344_s2 + $0x58] sm:$0xff]   ;;  %v2110_v21 = vpack.c.bf16 %v2103_v13, %v2102_v12  ;;  %v4863_v5 = vld [vmem:[%s6344_s2 + $0x1e8] sm:$0xff]  }
 0x110   :  { %4486 = vmatmul.mubr.msk.bf16.vlgmr.msra.gmra.mrb[8].mxu1 %vm428_vm2, %v1857_v22  ;;  %v1981_v17 = vld [vmem:[%s6348_s6 + $0x37] sm:$0xff]  ;;  %v4852_v22 = vld [vmem:[%s6344_s2 + $0x60] sm:$0xff]  }
 0x111   :  { %4494 = vmatpush3.bf16.msra.mxu1 %v4837_v7  ;;  %4489 = vmatprep.mubr.msk.bf16.mxu1 %vm428_vm2, %v1858_v23  ;;  %v4287_v28 = vpop.f32.mrb[20].mxu0  ;;  %v1986_v19 = vpack.c.bf16 %v1982_v9, %v1981_v17  ;;  %v4851_v20 = vld [vmem:[%s6344_s2 + $0x1b8] sm:$0xff]   ;;  %v4865_v9 = vld [vmem:[%s6344_s2 + $0x1f0] sm:$0xff]  }
 0x112   :  { %4495 = vmatprep.subr.bf16.mxu1 %v4839_v25  ;;  %451 = vst.msk [vmem:[%s6348_s6 + $0xb0] sm:$0xff] %vm428_vm2, %v4287_v28  ;;  %v365_v32 = vpop.f32.mrb[21].mxu0  ;;  %4320 = vmatpush3.bf16.msra.mxu0 %v4838_v24  ;;  %v492_v33 = vld [vmem:[%s6348_s6 + $0x80] sm:$0x3]  ;;  %v1855_v35 = vld [vmem:[%s6348_s6 + $0x86] sm:$0x3] }
 0x113   :  { %v1854_v34 = vld [vmem:[%s6348_s6 + $0x7e] sm:$0xff]  ;;  %449 = vst.msk [vmem:[%s6348_s6 + $0xa0] sm:$0xff] %vm428_vm2, %v365_v32  ;;  %v496_v36 = vpack.c.bf16 %v492_v33, %v491_v29  ;;  %4321 = vmatprep.subr.bf16.mxu0 %v4840_v26  ;;  %v4288_v40 = vpop.f32.mrb[22].mxu0  ;;  %v707_v28 = vld [vmem:[%s6348_s6 + $0x11] sm:$0xff]  ;;  %v2105_v29 = vld [vmem:[%s6348_s6 + $0x67] sm:$0xff] }
 0x114   :  { %452 = vst.msk [vmem:[%s6348_s6 + $0xb8] sm:$0xff] %vm428_vm2, %v4288_v40  ;;  %v368_v42 = vpop.f32.mrb[23].mxu0  ;;  %v1859_v43 = vpack.c.bf16 %v1855_v35, %v1854_v34  ;;  %v708_v23 = vld [vmem:[%s6348_s6 + $0x19] sm:$0xff]  ;;  %v709_v24 = vld [vmem:[%s6348_s6 + $0x21] sm:$0xff]  ;;  %v2106_v33 = vld [vmem:[%s6348_s6 + $0x6f] sm:$0xff]  ;;  %v2111_v40 = vpack.c.bf16 %v2105_v29, %v2104_v38 }
 0x115   :  { %4496 = vmatpush3.bf16.msra.mxu1 %v4839_v25  ;;  %4314 = vmatmul.mubr.msk.bf16.gmra.mrb[40].mxu0 %vm428_vm2, %v496_v36  ;;  %450 = vst.msk [vmem:[%s6348_s6 + $0xa8] sm:$0xff] %vm428_vm2, %v368_v42  ;;  %v710_v25 = vld [vmem:[%s6348_s6 + $0x29] sm:$0xff]  ;;  %v714_v32 = vpack.c.bf16 %v708_v23, %v707_v28  ;;  %v2107_v34 = vld [vmem:[%s6348_s6 + $0x77] sm:$0xff]  ;;  %v2109_v52 = vld [vmem:[%s6348_s6 + $0x87] sm:$0x3] }
 0x116   :  { %4497 = vmatprep.subr.bf16.mxu1 %v4841_v27  ;;  %4322 = vmatpush3.bf16.msra.mxu0 %v4840_v26  ;;  %v4853_v26 = vld [vmem:[%s6344_s2 + $0x1c0] sm:$0xff]   ;;  %v4854_v35 = vld [vmem:[%s6344_s2 + $0x68] sm:$0xff]   ;;  %v715_v37 = vpack.c.bf16 %v710_v25, %v709_v24  ;;  %v2112_v42 = vpack.c.bf16 %v2107_v34, %v2106_v33  ;;  %v4866_v13 = vld [vmem:[%s6344_s2 + $0x98] sm:$0xff]  }
 0x117   :  { %4325 = vmatprep.mubr.msk.bf16.mxu0 %vm428_vm2, %v473_v41  ;;  %4323 = vmatprep.subr.bf16.mxu0 %v4842_v31  ;;  %v4855_v41 = vld [vmem:[%s6344_s2 + $0x1c8] sm:$0xff]   ;;  %v2108_v57 = vld [vmem:[%s6348_s6 + $0x7f] sm:$0xff]  ;;  %v2356_v17 = vld [vmem:[%s6348_s6 + $0x96] sm:$0xff] }
 0x118   :  { %4490 = vmatmul.mubr.msk.bf16.gmra.mrb[4].mxu1 %vm428_vm2, %v1859_v43  ;;  %v4856_v43 = vld [vmem:[%s6344_s2 + $0x70] sm:$0xff]   ;;  %v2113_v58 = vpack.c.bf16 %v2109_v52, %v2108_v57  ;;  %v838_v47 = vld [vmem:[%s6348_s6 + $0x79] sm:$0xff]  ;;  %v839_v56 = vld [vmem:[%s6348_s6 + $0x81] sm:$0x3] }
 0x119   :  { %4498 = vmatpush3.bf16.msra.mxu1 %v4841_v27  ;;  %4501 = vmatprep.mubr.msk.bf16.mxu1 %vm428_vm2, %v1983_v45  ;;  %v4291_v50 = vpop.f32.mrb[24].mxu0  ;;  %v712_v45 = vld [vmem:[%s6348_s6 + $0x39] sm:$0x3]  ;;  %v964_v23 = vld [vmem:[%s6348_s6 + $0x2a] sm:$0xff]  ;;  %v4869_v24 = vld [vmem:[%s6344_s2 + $0x200] sm:$0xff]  }
 0x11a   :  { %4499 = vmatprep.subr.bf16.mxu1 %v4843_v44  ;;  %4324 = vmatpush3.bf16.msra.mxu0 %v4842_v31  ;;  %455 = vst.msk [vmem:[%s6348_s6 + $0xd0] sm:$0xff] %vm428_vm2, %v4291_v50  ;;  %v381_v54 = vpop.f32.mrb[25].mxu0  ;;  %v4857_v50 = vld [vmem:[%s6344_s2 + $0x1d0] sm:$0xff]   ;;  %v2357_v12 = vld [vmem:[%s6348_s6 + $0x9e] sm:$0xff] }
 0x11b   :  { %4333 = vmatprep.subr.bf16.mxu0 %v4844_v46  ;;  %453 = vst.msk [vmem:[%s6348_s6 + $0xc0] sm:$0xff] %vm428_vm2, %v381_v54  ;;  %v4292_v59 = vpop.f32.mrb[26].mxu0  ;;  %v4858_v54 = vld [vmem:[%s6344_s2 + $0x78] sm:$0xff]   ;;  %v4876_v57 = vld [vmem:[%s6344_s2 + $0xc0] sm:$0xff]  }
 0x11c   :  { %456 = vst.msk [vmem:[%s6348_s6 + $0xd8] sm:$0xff] %vm428_vm2, %v4292_v59  ;;  %v384_v62 = vpop.f32.mrb[27].mxu0  ;;  %v4859_v59 = vld [vmem:[%s6344_s2 + $0x1d8] sm:$0xff]  }
 0x11d   :  { %4500 = vmatpush3.bf16.msra.mxu1 %v4843_v44  ;;  %4326 = vmatmul.mubr.msk.bf16.vlgmr.msra.gmra.mrb[44].mxu0 %vm428_vm2, %v474_v55  ;;  %454 = vst.msk [vmem:[%s6348_s6 + $0xc8] sm:$0xff] %vm428_vm2, %v384_v62  ;;  %v711_v44 = vld [vmem:[%s6348_s6 + $0x31] sm:$0xff]  ;;  %v835_v62 = vld [vmem:[%s6348_s6 + $0x61] sm:$0xff] }
 0x11e   :  { %4509 = vmatprep.subr.bf16.mxu1 %v4845_v49  ;;  %4329 = vmatprep.mubr.msk.bf16.mxu0 %vm428_vm2, %v475_v60  ;;  %v2237_v60 = vpack.c.bf16 %v5360_v51, %v5294_v30  ;;  %v837_v30 = vld [vmem:[%s6348_s6 + $0x71] sm:$0xff]  ;;  %v4861_v51 = vld [vmem:[%s6344_s2 + $0x1e0] sm:$0xff]  }
 0x11f   :  { %4334 = vmatpush3.bf16.msra.mxu0 %v4844_v46  ;;  %v832_v46 = vld [vmem:[%s6348_s6 + $0x49] sm:$0xff]  ;;  %v961_v25 = vld [vmem:[%s6348_s6 + $0x12] sm:$0xff] }
 0x120   :  { %4502 = vmatmul.mubr.msk.bf16.vlgmr.msra.gmra.mrb[12].mxu1 %vm428_vm2, %v1984_v63  ;;  %4335 = vmatprep.subr.bf16.mxu0 %v4846_v53  ;;  %v836_v63 = vld [vmem:[%s6348_s6 + $0x69] sm:$0xff]  ;;  %v2360_v29 = vld [vmem:[%s6348_s6 + $0xb6] sm:$0xff] }
 0x121   :  { %4510 = vmatpush3.bf16.msra.mxu1 %v4845_v49  ;;  %4505 = vmatprep.mubr.msk.bf16.mxu1 %vm428_vm2, %v1985_v1  ;;  %v4295_v7 = vpop.f32.mrb[28].mxu0  ;;  %v833_v49 = vld [vmem:[%s6348_s6 + $0x51] sm:$0xff]  ;;  %v842_v3 = vpack.c.bf16 %v837_v30, %v836_v63 }
 0x122   :  { %4511 = vmatprep.subr.bf16.mxu1 %v4847_v0  ;;  %459 = vst.msk [vmem:[%s6348_s6 + $0xf0] sm:$0xff] %vm428_vm2, %v4295_v7  ;;  %v397_v10 = vpop.f32.mrb[29].mxu0  ;;  %v840_v55 = vpack.c.bf16 %v833_v49, %v832_v46  ;;  %v4864_v7 = vld [vmem:[%s6344_s2 + $0x90] sm:$0xff]  }
 0x123   :  { %4336 = vmatpush3.bf16.msra.mxu0 %v4846_v53  ;;  %457 = vst.msk [vmem:[%s6348_s6 + $0xe0] sm:$0xff] %vm428_vm2, %v397_v10  ;;  %v4296_v15 = vpop.f32.mrb[30].mxu0  ;;  %v716_v53 = vpack.c.bf16 %v712_v45, %v711_v44  ;;  %v2236_v10 = vld [vmem:[%s6348_s6 + $0x40] sm:$0x3]  ;;  %v965_v38 = vld [vmem:[%s6348_s6 + $0x32] sm:$0xff] }
 0x124   :  { %4337 = vmatprep.subr.bf16.mxu0 %v4848_v2  ;;  %460 = vst.msk [vmem:[%s6348_s6 + $0xf8] sm:$0xff] %vm428_vm2, %v4296_v15  ;;  %v400_v18 = vpop.f32.mrb[31].mxu0  ;;  %v2235_v15 = vld [vmem:[%s6348_s6 + $0x38] sm:$0xff]  ;;  %v2363_v44 = vld [vmem:[%s6348_s6 + $0xce] sm:$0x3] }
 0x125   :  { %4512 = vmatpush3.bf16.msra.mxu1 %v4847_v0  ;;  %4330 = vmatmul.mubr.msk.bf16.gmra.mrb[40].mxu0 %vm428_vm2, %v476_v11  ;;  %458 = vst.msk [vmem:[%s6348_s6 + $0xe8] sm:$0xff] %vm428_vm2, %v400_v18  ;;  %v834_v0 = vld [vmem:[%s6348_s6 + $0x59] sm:$0xff]  ;;  %v843_v11 = vpack.c.bf16 %v839_v56, %v838_v47  ;;  %v1093_v47 = vld [vmem:[%s6348_s6 + $0xc8] sm:$0x3] }
 0x126   :  { %4513 = vmatprep.subr.bf16.mxu1 %v4849_v6  ;;  %4341 = vmatprep.mubr.msk.bf16.mxu0 %vm428_vm2, %v713_v16  ;;  %v841_v1 = vpack.c.bf16 %v835_v62, %v834_v0  ;;  %v2240_v16 = vpack.c.bf16 %v2236_v10, %v2235_v15  ;;  %v4867_v18 = vld [vmem:[%s6344_s2 + $0x1f8] sm:$0xff]   ;;  %v5739_v62 = vld [vmem:[%s6348_s6 + $0xa0] sm:$0xff] }
 0x127   :  { %4338 = vmatpush3.bf16.msra.mxu0 %v4848_v2  ;;  %v4862_v2 = vld [vmem:[%s6344_s2 + $0x88] sm:$0xff]   ;;  %v1213_v56 = vld [vmem:[%s6348_s6 + $0xd8] sm:$0xff] }
 0x128   :  { %4506 = vmatmul.mubr.msk.bf16.gmra.mrb[4].mxu1 %vm428_vm2, %v1986_v19  ;;  %4339 = vmatprep.subr.bf16.mxu0 %v4850_v14  ;;  %v2364_v19 = vpack.c.bf16 %v2357_v12, %v2356_v17  ;;  %v2610_v17 = vld [vmem:[%s6348_s6 + $0x97] sm:$0xff] }
 0x129   :  { %4514 = vmatpush3.bf16.msra.mxu1 %v4849_v6  ;;  %4517 = vmatprep.mubr.msk.bf16.mxu1 %vm428_vm2, %v2110_v21  ;;  %v4299_v27 = vpop.f32.mrb[32].mxu0  ;;  %v2239_v6 = vpack.c.bf16 %v5427_v8, %v5352_v48  ;;  %v959_v48 = vld [vmem:[%s6348_s6 + $0x2] sm:$0xff]  ;;  %v960_v8 = vld [vmem:[%s6348_s6 + $0xa] sm:$0xff]  ;;  %v962_v21 = vld [vmem:[%s6348_s6 + $0x1a] sm:$0xff] }
 0x12a   :  { %4515 = vmatprep.subr.bf16.mxu1 %v4851_v20  ;;  %463 = vst.msk [vmem:[%s6348_s6 + $0x110] sm:$0xff] %vm428_vm2, %v4299_v27  ;;  %v413_v31 = vpop.f32.mrb[33].mxu0  ;;  %v2359_v27 = vld [vmem:[%s6348_s6 + $0xae] sm:$0xff]  ;;  %v968_v28 = vpack.c.bf16 %v962_v21, %v961_v25  ;;  %v2483_v46 = vld [vmem:[%s6348_s6 + $0xde] sm:$0xff] }
 0x12b   :  { %4340 = vmatpush3.bf16.msra.mxu0 %v4850_v14  ;;  %461 = vst.msk [vmem:[%s6348_s6 + $0x100] sm:$0xff] %vm428_vm2, %v413_v31  ;;  %v4300_v36 = vpop.f32.mrb[34].mxu0  ;;  %v967_v14 = vpack.c.bf16 %v960_v8, %v959_v48  ;;  %v2361_v31 = vld [vmem:[%s6348_s6 + $0xbe] sm:$0xff]  ;;  %v2486_v30 = vld [vmem:[%s6348_s6 + $0xf6] sm:$0xff] }
 0x12c   :  { %4349 = vmatprep.subr.bf16.mxu0 %v4852_v22  ;;  %464 = vst.msk [vmem:[%s6348_s6 + $0x118] sm:$0xff] %vm428_vm2, %v4300_v36  ;;  %v416_v39 = vpop.f32.mrb[35].mxu0  ;;  %v2366_v36 = vpack.c.bf16 %v2361_v31, %v2360_v29  ;;  %v2484_v49 = vld [vmem:[%s6348_s6 + $0xe6] sm:$0xff]  ;;  %v2485_v63 = vld [vmem:[%s6348_s6 + $0xee] sm:$0xff]  ;;  %v2614_v29 = vld [vmem:[%s6348_s6 + $0xb7] sm:$0xff] }
 0x12d   :  { %4516 = vmatpush3.bf16.msra.mxu1 %v4851_v20  ;;  %462 = vst.msk [vmem:[%s6348_s6 + $0x108] sm:$0xff] %vm428_vm2, %v416_v39  ;;  %v4868_v20 = vld [vmem:[%s6344_s2 + $0xa0] sm:$0xff]   ;;  %v966_v39 = vld [vmem:[%s6348_s6 + $0x3a] sm:$0x3]  ;;  %v4881_v8 = vld [vmem:[%s6344_s2 + $0x230] sm:$0xff]  }
 0x12e   :  { %4342 = vmatmul.mubr.msk.bf16.vlgmr.msra.gmra.mrb[48].mxu0 %vm428_vm2, %v714_v32  ;;  %4525 = vmatprep.subr.bf16.mxu1 %v4853_v26  ;;  %v4870_v32 = vld [vmem:[%s6344_s2 + $0xa8] sm:$0xff]   ;;  %v970_v45 = vpack.c.bf16 %v966_v39, %v965_v38  ;;  %v1214_v48 = vld [vmem:[%s6348_s6 + $0xe0] sm:$0xff] }
 0x12f   :  { %4345 = vmatprep.mubr.msk.bf16.mxu0 %vm428_vm2, %v715_v37  ;;  %4350 = vmatpush3.bf16.msra.mxu0 %v4852_v22  ;;  %v963_v22 = vld [vmem:[%s6348_s6 + $0x22] sm:$0xff]  ;;  %v4872_v37 = vld [vmem:[%s6344_s2 + $0xb0] sm:$0xff]   ;;  %v1221_v15 = vpack.c.bf16 %v1214_v48, %v1213_v56 }
 0x130   :  { %4518 = vmatmul.mubr.msk.bf16.vlgmr.msra.gmra.mrb[16].mxu1 %vm428_vm2, %v2111_v40  ;;  %4351 = vmatprep.subr.bf16.mxu0 %v4854_v35  ;;  %v969_v33 = vpack.c.bf16 %v964_v23, %v963_v22  ;;  %v1086_v40 = vld [vmem:[%s6348_s6 + $0x90] sm:$0xff]  ;;  %v1215_v21 = vld [vmem:[%s6348_s6 + $0xe8] sm:$0xff]  ;;  %v1217_v23 = vld [vmem:[%s6348_s6 + $0xf8] sm:$0xff] }
 0x131   :  { %4526 = vmatpush3.bf16.msra.mxu1 %v4853_v26  ;;  %4521 = vmatprep.mubr.msk.bf16.mxu1 %vm428_vm2, %v2112_v42  ;;  %v2358_v26 = vld [vmem:[%s6348_s6 + $0xa6] sm:$0xff]  ;;  %v4873_v42 = vld [vmem:[%s6344_s2 + $0x210] sm:$0xff]  }
 0x132   :  { %4527 = vmatprep.subr.bf16.mxu1 %v4855_v41  ;;  %v2365_v34 = vpack.c.bf16 %v2359_v27, %v2358_v26  ;;  %v2487_v0 = vld [vmem:[%s6348_s6 + $0xfe] sm:$0xff]  ;;  %v1216_v22 = vld [vmem:[%s6348_s6 + $0xf0] sm:$0xff]  ;;  %v2612_v26 = vld [vmem:[%s6348_s6 + $0xa7] sm:$0xff] }
 0x133   :  { %4352 = vmatpush3.bf16.msra.mxu0 %v4854_v35  ;;  %v4871_v35 = vld [vmem:[%s6344_s2 + $0x208] sm:$0xff]   ;;  %v4885_v25 = vld [vmem:[%s6344_s2 + $0x240] sm:$0xff]   ;;  %v1220_v39 = vld [vmem:[%s6348_s6 + $0x110] sm:$0x3] }
 0x134   :  { %4353 = vmatprep.subr.bf16.mxu0 %v4856_v43  ;;  %v2489_v10 = vld [vmem:[%s6348_s6 + $0x10e] sm:$0xff]  ;;  %v2615_v31 = vld [vmem:[%s6348_s6 + $0xbf] sm:$0xff] }
 0x135   :  { %4528 = vmatpush3.bf16.msra.mxu1 %v4855_v41  ;;  %v5687_v41 = vld [vmem:[%s6348_s6 + $0x98] sm:$0xff]  ;;  %v2613_v27 = vld [vmem:[%s6348_s6 + $0xaf] sm:$0xff] }
 0x136   :  { %4346 = vmatmul.mubr.msk.bf16.gmra.mrb[40].mxu0 %vm428_vm2, %v716_v53  ;;  %4529 = vmatprep.subr.bf16.mxu1 %v4857_v50  ;;  %v1094_v52 = vpack.c.bf16 %v5687_v41, %v1086_v40  ;;  %v1219_v38 = vld [vmem:[%s6348_s6 + $0x108] sm:$0xff]  ;;  %v1341_v40 = vld [vmem:[%s6348_s6 + $0x99] sm:$0xff] }
 0x137   :  { %4354 = vmatpush3.bf16.msra.mxu0 %v4856_v43  ;;  %4357 = vmatprep.mubr.msk.bf16.mxu0 %vm428_vm2, %v840_v55  ;;  %v2362_v43 = vld [vmem:[%s6348_s6 + $0xc6] sm:$0xff]  ;;  %v2491_v55 = vpack.c.bf16 %v2484_v49, %v2483_v46  ;;  %v1224_v46 = vpack.c.bf16 %v1220_v39, %v1219_v38  ;;  %v1340_v49 = vld [vmem:[%s6348_s6 + $0x91] sm:$0xff] }
 0x138   :  { %4522 = vmatmul.mubr.msk.bf16.gmra.mrb[4].mxu1 %vm428_vm2, %v2113_v58  ;;  %4355 = vmatprep.subr.bf16.mxu0 %v4858_v54  ;;  %v2367_v53 = vpack.c.bf16 %v2363_v44, %v2362_v43  ;;  %v5721_v58 = vld [vmem:[%s6348_s6 + $0xa8] sm:$0xff] }
 0x139   :  { %4530 = vmatpush3.bf16.msra.mxu1 %v4857_v50  ;;  %4533 = vmatprep.mubr.msk.bf16.mxu1 %vm428_vm2, %v2237_v60  ;;  %v4874_v50 = vld [vmem:[%s6344_s2 + $0xb8] sm:$0xff]   ;;  %v2616_v43 = vld [vmem:[%s6348_s6 + $0xc7] sm:$0xff]  ;;  %v2617_v44 = vld [vmem:[%s6348_s6 + $0xcf] sm:$0x3] }
 0x13a   :  { %4531 = vmatprep.subr.bf16.mxu1 %v4859_v59  ;;  %v5731_v60 = vld [vmem:[%s6348_s6 + $0xb8] sm:$0xff]  ;;  %v4895_v48 = vld [vmem:[%s6344_s2 + $0x268] sm:$0xff]  }
 0x13b   :  { %4356 = vmatpush3.bf16.msra.mxu0 %v4858_v54  ;;  %v4875_v54 = vld [vmem:[%s6344_s2 + $0x218] sm:$0xff]   ;;  %v2991_v38 = vld [vmem:[%s6348_s6 + $0xc] sm:$0xff] }
 0x13c   :  { %4365 = vmatprep.subr.bf16.mxu0 %v4860_v61 }
 0x13d   :  { %4532 = vmatpush3.bf16.msra.mxu1 %v4859_v59  ;;  %v5726_v59 = vld [vmem:[%s6348_s6 + $0xb0] sm:$0xff] }
 0x13e   :  { %4358 = vmatmul.mubr.msk.bf16.vlgmr.msra.gmra.mrb[52].mxu0 %vm428_vm2, %v841_v1  ;;  %4541 = vmatprep.subr.bf16.mxu1 %v4861_v51  ;;  %v2488_v1 = vld [vmem:[%s6348_s6 + $0x106] sm:$0xff] }
 0x13f   :  { %4361 = vmatprep.mubr.msk.bf16.mxu0 %vm428_vm2, %v842_v3  ;;  %4366 = vmatpush3.bf16.msra.mxu0 %v4860_v61  ;;  %v4877_v61 = vld [vmem:[%s6344_s2 + $0x220] sm:$0xff]   ;;  %v1096_v3 = vpack.c.bf16 %v5731_v60, %v5726_v59 }
 0x140   :  { %4534 = vmatmul.mubr.msk.bf16.vlgmr.msra.gmra.mrb[20].mxu1 %vm428_vm2, %v2238_v4  ;;  %4367 = vmatprep.subr.bf16.mxu0 %v4862_v2  ;;  %v2492_v4 = vpack.c.bf16 %v2486_v30, %v2485_v63  ;;  %v1342_v63 = vld [vmem:[%s6348_s6 + $0xa1] sm:$0xff]  ;;  %v1343_v30 = vld [vmem:[%s6348_s6 + $0xa9] sm:$0xff] }
 0x141   :  { %4542 = vmatpush3.bf16.msra.mxu1 %v4861_v51  ;;  %4537 = vmatprep.mubr.msk.bf16.mxu1 %vm428_vm2, %v2239_v6  ;;  %v1095_v51 = vpack.c.bf16 %v5721_v58, %v5739_v62  ;;  %v2493_v6 = vpack.c.bf16 %v2488_v1, %v2487_v0  ;;  %v1345_v0 = vld [vmem:[%s6348_s6 + $0xb9] sm:$0xff] }
 0x142   :  { %4543 = vmatprep.subr.bf16.mxu1 %v4863_v5  ;;  %v4893_v1 = vld [vmem:[%s6344_s2 + $0x260] sm:$0xff]  }
 0x143   :  { %4368 = vmatpush3.bf16.msra.mxu0 %v4862_v2  ;;  %v4878_v2 = vld [vmem:[%s6344_s2 + $0xc8] sm:$0xff]  }
 0x144   :  { %4369 = vmatprep.subr.bf16.mxu0 %v4864_v7 }
 0x145   :  { %4544 = vmatpush3.bf16.msra.mxu1 %v4863_v5  ;;  %v4879_v5 = vld [vmem:[%s6344_s2 + $0x228] sm:$0xff]  }
 0x146   :  { %4362 = vmatmul.mubr.msk.bf16.gmra.mrb[40].mxu0 %vm428_vm2, %v843_v11  ;;  %4545 = vmatprep.subr.bf16.mxu1 %v4865_v9  ;;  %v2490_v11 = vld [vmem:[%s6348_s6 + $0x116] sm:$0x3] }
 0x147   :  { %4370 = vmatpush3.bf16.msra.mxu0 %v4864_v7  ;;  %4373 = vmatprep.mubr.msk.bf16.mxu0 %vm428_vm2, %v967_v14  ;;  %v4880_v7 = vld [vmem:[%s6344_s2 + $0xd0] sm:$0xff]   ;;  %v4882_v14 = vld [vmem:[%s6344_s2 + $0xd8] sm:$0xff]  }
 0x148   :  { %4538 = vmatmul.mubr.msk.bf16.gmra.mrb[4].mxu1 %vm428_vm2, %v2240_v16  ;;  %4371 = vmatprep.subr.bf16.mxu0 %v4866_v13  ;;  %v2494_v16 = vpack.c.bf16 %v2490_v11, %v2489_v10  ;;  %v4896_v10 = vld [vmem:[%s6344_s2 + $0x110] sm:$0xff]   ;;  %v1346_v11 = vld [vmem:[%s6348_s6 + $0xc1] sm:$0xff] }
 0x149   :  { %4546 = vmatpush3.bf16.msra.mxu1 %v4865_v9  ;;  %4549 = vmatprep.mubr.msk.bf16.mxu1 %vm428_vm2, %v2364_v19  ;;  %v5785_v9 = vld [vmem:[%s6348_s6 + $0xc0] sm:$0xff] }
 0x14a   :  { %4547 = vmatprep.subr.bf16.mxu1 %v4867_v18  ;;  %v1097_v12 = vpack.c.bf16 %v1093_v47, %v5785_v9 }
 0x14b   :  { %4372 = vmatpush3.bf16.msra.mxu0 %v4866_v13  ;;  %v2611_v13 = vld [vmem:[%s6348_s6 + $0x9f] sm:$0xff] }
 0x14c   :  { %4381 = vmatprep.subr.bf16.mxu0 %v4868_v20  ;;  %v2618_v19 = vpack.c.bf16 %v2611_v13, %v2610_v17  ;;  %v1467_v13 = vld [vmem:[%s6348_s6 + $0xd9] sm:$0xff]  ;;  %v2744_v17 = vld [vmem:[%s6348_s6 + $0x117] sm:$0x3] }
 0x14d   :  { %4548 = vmatpush3.bf16.msra.mxu1 %v4867_v18  ;;  %v4883_v18 = vld [vmem:[%s6344_s2 + $0x238] sm:$0xff]  }
 0x14e   :  { %4374 = vmatmul.mubr.msk.bf16.vlgmr.msra.gmra.mrb[56].mxu0 %vm428_vm2, %v968_v28  ;;  %4557 = vmatprep.subr.bf16.mxu1 %v4869_v24  ;;  %v1222_v28 = vpack.c.bf16 %v1216_v22, %v1215_v21  ;;  %v4899_v22 = vld [vmem:[%s6344_s2 + $0x278] sm:$0xff]  }
 0x14f   :  { %4377 = vmatprep.mubr.msk.bf16.mxu0 %vm428_vm2, %v969_v33  ;;  %4382 = vmatpush3.bf16.msra.mxu0 %v4868_v20  ;;  %v4884_v20 = vld [vmem:[%s6344_s2 + $0xe0] sm:$0xff]  }
 0x150   :  { %4550 = vmatmul.mubr.msk.bf16.vlgmr.msra.gmra.mrb[24].mxu1 %vm428_vm2, %v2365_v34  ;;  %4383 = vmatprep.subr.bf16.mxu0 %v4870_v32  ;;  %v2619_v34 = vpack.c.bf16 %v2613_v27, %v2612_v26  ;;  %v1470_v26 = vld [vmem:[%s6348_s6 + $0xf1] sm:$0xff]  ;;  %v4901_v27 = vld [vmem:[%s6344_s2 + $0x280] sm:$0xff]  }
 0x151   :  { %4558 = vmatpush3.bf16.msra.mxu1 %v4869_v24  ;;  %4553 = vmatprep.mubr.msk.bf16.mxu1 %vm428_vm2, %v2366_v36  ;;  %v1218_v24 = vld [vmem:[%s6348_s6 + $0x100] sm:$0xff]  ;;  %v2620_v36 = vpack.c.bf16 %v2615_v31, %v2614_v29  ;;  %v4902_v29 = vld [vmem:[%s6344_s2 + $0x128] sm:$0xff]  }
 0x152   :  { %4559 = vmatprep.subr.bf16.mxu1 %v4871_v35  ;;  %v1223_v33 = vpack.c.bf16 %v1218_v24, %v1217_v23  ;;  %v2872_v23 = vpack.c.bf16 %v5739_v62, %v5687_v41  ;;  %v4900_v24 = vld [vmem:[%s6344_s2 + $0x120] sm:$0xff]  }
 0x153   :  { %4384 = vmatpush3.bf16.msra.mxu0 %v4870_v32  ;;  %v4886_v32 = vld [vmem:[%s6344_s2 + $0xe8] sm:$0xff]   ;;  %v1471_v41 = vld [vmem:[%s6348_s6 + $0xf9] sm:$0xff] }
 0x154   :  { %4385 = vmatprep.subr.bf16.mxu0 %v4872_v37  ;;  %v1472_v62 = vld [vmem:[%s6348_s6 + $0x101] sm:$0xff] }
 0x155   :  { %4560 = vmatpush3.bf16.msra.mxu1 %v4871_v35  ;;  %v4887_v35 = vld [vmem:[%s6344_s2 + $0x248] sm:$0xff]   ;;  %v1477_v31 = vpack.c.bf16 %v1472_v62, %v1471_v41  ;;  %v4915_v41 = vld [vmem:[%s6344_s2 + $0x2d8] sm:$0xff]  }
 0x156   :  { %4378 = vmatmul.mubr.msk.bf16.gmra.mrb[40].mxu0 %vm428_vm2, %v970_v45  ;;  %4561 = vmatprep.subr.bf16.mxu1 %v4873_v42  ;;  %v4890_v45 = vld [vmem:[%s6344_s2 + $0xf8] sm:$0xff]  }
 0x157   :  { %4386 = vmatpush3.bf16.msra.mxu0 %v4872_v37  ;;  %4389 = vmatprep.mubr.msk.bf16.mxu0 %vm428_vm2, %v1094_v52  ;;  %v4888_v37 = vld [vmem:[%s6344_s2 + $0xf0] sm:$0xff]   ;;  %v2738_v52 = vld [vmem:[%s6348_s6 + $0xe7] sm:$0xff] }
 0x158   :  { %4554 = vmatmul.mubr.msk.bf16.gmra.mrb[4].mxu1 %vm428_vm2, %v2367_v53  ;;  %4387 = vmatprep.subr.bf16.mxu0 %v4874_v50  ;;  %v1348_v53 = vpack.c.bf16 %v1341_v40, %v1340_v49  ;;  %v1594_v40 = vld [vmem:[%s6348_s6 + $0x92] sm:$0xff] }
 0x159   :  { %4562 = vmatpush3.bf16.msra.mxu1 %v4873_v42  ;;  %4565 = vmatprep.mubr.msk.bf16.mxu1 %vm428_vm2, %v2491_v55  ;;  %v4889_v42 = vld [vmem:[%s6344_s2 + $0x250] sm:$0xff]   ;;  %v4891_v55 = vld [vmem:[%s6344_s2 + $0x258] sm:$0xff]  }
 0x15a   :  { %4563 = vmatprep.subr.bf16.mxu1 %v4875_v54 }
 0x15b   :  { %4388 = vmatpush3.bf16.msra.mxu0 %v4874_v50  ;;  %v2737_v50 = vld [vmem:[%s6348_s6 + $0xdf] sm:$0xff] }
 0x15c   :  { %4397 = vmatprep.subr.bf16.mxu0 %v4876_v57 }
 0x15d   :  { %4564 = vmatpush3.bf16.msra.mxu1 %v4875_v54  ;;  %v2621_v54 = vpack.c.bf16 %v2617_v44, %v2616_v43  ;;  %v4906_v43 = vld [vmem:[%s6344_s2 + $0x138] sm:$0xff]  }
 0x15e   :  { %4390 = vmatmul.mubr.msk.bf16.vlgmr.msra.gmra.mrb[60].mxu0 %vm428_vm2, %v1095_v51  ;;  %4573 = vmatprep.subr.bf16.mxu1 %v4877_v61  ;;  %v1344_v51 = vld [vmem:[%s6348_s6 + $0xb1] sm:$0xff] }
 0x15f   :  { %4393 = vmatprep.mubr.msk.bf16.mxu0 %vm428_vm2, %v1096_v3  ;;  %4398 = vmatpush3.bf16.msra.mxu0 %v4876_v57  ;;  %v2745_v57 = vpack.c.bf16 %v2738_v52, %v2737_v50  ;;  %v2740_v3 = vld [vmem:[%s6348_s6 + $0xf7] sm:$0xff]  ;;  %v1350_v47 = vpack.c.bf16 %v1345_v0, %v1344_v51  ;;  %v1596_v50 = vld [vmem:[%s6348_s6 + $0xa2] sm:$0xff]  ;;  %v1597_v52 = vld [vmem:[%s6348_s6 + $0xaa] sm:$0xff] }
 0x160   :  { %4566 = vmatmul.mubr.msk.bf16.vlgmr.msra.gmra.mrb[28].mxu1 %vm428_vm2, %v2492_v4  ;;  %4399 = vmatprep.subr.bf16.mxu0 %v4878_v2  ;;  %v1349_v4 = vpack.c.bf16 %v1343_v30, %v1342_v63  ;;  %v2995_v63 = vld [vmem:[%s6348_s6 + $0x2c] sm:$0xff]  ;;  %v2996_v30 = vld [vmem:[%s6348_s6 + $0x34] sm:$0xff]  ;;  %v2993_v0 = vld [vmem:[%s6348_s6 + $0x1c] sm:$0xff] }
 0x161   :  { %4574 = vmatpush3.bf16.msra.mxu1 %v4877_v61  ;;  %4569 = vmatprep.mubr.msk.bf16.mxu1 %vm428_vm2, %v2493_v6  ;;  %v4892_v61 = vld [vmem:[%s6344_s2 + $0x100] sm:$0xff]  }
 0x162   :  { %4575 = vmatprep.subr.bf16.mxu1 %v4879_v5  ;;  %v2742_v6 = vld [vmem:[%s6348_s6 + $0x107] sm:$0xff] }
 0x163   :  { %4400 = vmatpush3.bf16.msra.mxu0 %v4878_v2  ;;  %v2739_v2 = vld [vmem:[%s6348_s6 + $0xef] sm:$0xff] }
 0x164   :  { %4401 = vmatprep.subr.bf16.mxu0 %v4880_v7  ;;  %v2746_v56 = vpack.c.bf16 %v2740_v3, %v2739_v2  ;;  %v4909_v2 = vld [vmem:[%s6344_s2 + $0x2a8] sm:$0xff]   ;;  %v3001_v3 = vpack.c.bf16 %v2996_v30, %v2995_v63 }
 0x165   :  { %4576 = vmatpush3.bf16.msra.mxu1 %v4879_v5  ;;  %v2741_v5 = vld [vmem:[%s6348_s6 + $0xff] sm:$0xff]  ;;  %v3499_v30 = vld [vmem:[%s6348_s6 + $0xe] sm:$0xff] }
 0x166   :  { %4394 = vmatmul.mubr.msk.bf16.gmra.mrb[40].mxu0 %vm428_vm2, %v1097_v12  ;;  %4577 = vmatprep.subr.bf16.mxu1 %v4881_v8  ;;  %v1347_v12 = vld [vmem:[%s6348_s6 + $0xc9] sm:$0x3] }
 0x167   :  { %4402 = vmatpush3.bf16.msra.mxu0 %v4880_v7  ;;  %4405 = vmatprep.mubr.msk.bf16.mxu0 %vm428_vm2, %v1221_v15  ;;  %v4894_v7 = vld [vmem:[%s6344_s2 + $0x108] sm:$0xff]   ;;  %v4897_v15 = vld [vmem:[%s6344_s2 + $0x270] sm:$0xff]  }
 0x168   :  { %4570 = vmatmul.mubr.msk.bf16.gmra.mrb[4].mxu1 %vm428_vm2, %v2494_v16  ;;  %4403 = vmatprep.subr.bf16.mxu0 %v4882_v14  ;;  %v2743_v16 = vld [vmem:[%s6348_s6 + $0x10f] sm:$0xff] }
 0x169   :  { %4578 = vmatpush3.bf16.msra.mxu1 %v4881_v8  ;;  %4581 = vmatprep.mubr.msk.bf16.mxu1 %vm428_vm2, %v2618_v19  ;;  %v2747_v8 = vpack.c.bf16 %v2742_v6, %v2741_v5  ;;  %v4898_v19 = vld [vmem:[%s6344_s2 + $0x118] sm:$0xff]   ;;  %v2748_v21 = vpack.c.bf16 %v2744_v17, %v2743_v16  ;;  %v1601_v5 = vld [vmem:[%s6348_s6 + $0xca] sm:$0x3]  ;;  %v4910_v6 = vld [vmem:[%s6344_s2 + $0x2b0] sm:$0xff]  }
 0x16a   :  { %4579 = vmatprep.subr.bf16.mxu1 %v4883_v18  ;;  %v3123_v16 = vld [vmem:[%s6348_s6 + $0x7c] sm:$0xff] }
 0x16b   :  { %4404 = vmatpush3.bf16.msra.mxu0 %v4882_v14  ;;  %v1468_v14 = vld [vmem:[%s6348_s6 + $0xe1] sm:$0xff] }
 0x16c   :  { %4413 = vmatprep.subr.bf16.mxu0 %v4884_v20 }
 0x16d   :  { %4580 = vmatpush3.bf16.msra.mxu1 %v4883_v18  ;;  %v1351_v18 = vpack.c.bf16 %v1347_v12, %v1346_v11  ;;  %v4911_v11 = vld [vmem:[%s6344_s2 + $0x2b8] sm:$0xff]  }
 0x16e   :  { %4406 = vmatmul.mubr.msk.bf16.vlgmr.msra.gmra.mrb[64].mxu0 %vm428_vm2, %v1222_v28  ;;  %4589 = vmatprep.subr.bf16.mxu1 %v4885_v25 }
 0x16f   :  { %4409 = vmatprep.mubr.msk.bf16.mxu0 %vm428_vm2, %v1223_v33  ;;  %4414 = vmatpush3.bf16.msra.mxu0 %v4884_v20  ;;  %v1475_v20 = vpack.c.bf16 %v1468_v14, %v1467_v13  ;;  %v4903_v33 = vld [vmem:[%s6344_s2 + $0x288] sm:$0xff]   ;;  %v4912_v13 = vld [vmem:[%s6344_s2 + $0x2c0] sm:$0xff]  }
 0x170   :  { %4582 = vmatmul.mubr.msk.bf16.vlgmr.msra.gmra.mrb[32].mxu1 %vm428_vm2, %v2619_v34  ;;  %4415 = vmatprep.subr.bf16.mxu0 %v4886_v32  ;;  %v2874_v34 = vpack.c.bf16 %v5785_v9, %v5731_v60  ;;  %v1595_v60 = vld [vmem:[%s6348_s6 + $0x9a] sm:$0xff]  ;;  %v4905_v9 = vld [vmem:[%s6344_s2 + $0x290] sm:$0xff]   ;;  %v3120_v14 = vld [vmem:[%s6348_s6 + $0x64] sm:$0xff] }
 0x171   :  { %4590 = vmatpush3.bf16.msra.mxu1 %v4885_v25  ;;  %4585 = vmatprep.mubr.msk.bf16.mxu1 %vm428_vm2, %v2620_v36  ;;  %v1469_v25 = vld [vmem:[%s6348_s6 + $0xe9] sm:$0xff]  ;;  %v1602_v44 = vpack.c.bf16 %v1595_v60, %v1594_v40  ;;  %v3252_v60 = vld [vmem:[%s6348_s6 + $0x45] sm:$0x3] }
 0x172   :  { %4591 = vmatprep.subr.bf16.mxu1 %v4887_v35  ;;  %v1476_v28 = vpack.c.bf16 %v1470_v26, %v1469_v25  ;;  %v2870_v36 = vld [vmem:[%s6348_s6 + $0xc8] sm:$0xff]  ;;  %v3246_v25 = vld [vmem:[%s6348_s6 + $0x15] sm:$0xff]  ;;  %v4920_v40 = vld [vmem:[%s6344_s2 + $0x300] sm:$0xff]  }
 0x173   :  { %4416 = vmatpush3.bf16.msra.mxu0 %v4886_v32  ;;  %v2873_v32 = vpack.c.bf16 %v5726_v59, %v5721_v58  ;;  %v1473_v58 = vld [vmem:[%s6348_s6 + $0x109] sm:$0xff]  ;;  %v1474_v59 = vld [vmem:[%s6348_s6 + $0x111] sm:$0x3] }
 0x174   :  { %4417 = vmatprep.subr.bf16.mxu0 %v4888_v37  ;;  %v1478_v39 = vpack.c.bf16 %v1474_v59, %v1473_v58  ;;  %v4918_v58 = vld [vmem:[%s6344_s2 + $0x2f0] sm:$0xff]   ;;  %v3251_v59 = vld [vmem:[%s6348_s6 + $0x3d] sm:$0xff] }
 0x175   :  { %4592 = vmatpush3.bf16.msra.mxu1 %v4887_v35  ;;  %v4904_v35 = vld [vmem:[%s6344_s2 + $0x130] sm:$0xff]  }
 0x176   :  { %4410 = vmatmul.mubr.msk.bf16.gmra.mrb[40].mxu0 %vm428_vm2, %v1224_v46  ;;  %4593 = vmatprep.subr.bf16.mxu1 %v4889_v42  ;;  %v4907_v46 = vld [vmem:[%s6344_s2 + $0x298] sm:$0xff]  }
 0x177   :  { %4418 = vmatpush3.bf16.msra.mxu0 %v4888_v37  ;;  %4421 = vmatprep.mubr.msk.bf16.mxu0 %vm428_vm2, %v1348_v53  ;;  %v2871_v37 = vld [vmem:[%s6348_s6 + $0xd0] sm:$0x3]  ;;  %v1598_v53 = vld [vmem:[%s6348_s6 + $0xb2] sm:$0xff] }
 0x178   :  { %4586 = vmatmul.mubr.msk.bf16.gmra.mrb[4].mxu1 %vm428_vm2, %v2621_v54  ;;  %4419 = vmatprep.subr.bf16.mxu0 %v4890_v45  ;;  %v1599_v54 = vld [vmem:[%s6348_s6 + $0xba] sm:$0xff] }
 0x179   :  { %4594 = vmatpush3.bf16.msra.mxu1 %v4889_v42  ;;  %4597 = vmatprep.mubr.msk.bf16.mxu1 %vm428_vm2, %v2745_v57  ;;  %v2992_v42 = vld [vmem:[%s6348_s6 + $0x14] sm:$0xff]  ;;  %v2994_v57 = vld [vmem:[%s6348_s6 + $0x24] sm:$0xff]  ;;  %v1604_v51 = vpack.c.bf16 %v1599_v54, %v1598_v53 }
 0x17a   :  { %4595 = vmatprep.subr.bf16.mxu1 %v4891_v55  ;;  %v2999_v49 = vpack.c.bf16 %v2992_v42, %v2991_v38  ;;  %v4919_v38 = vld [vmem:[%s6344_s2 + $0x2f8] sm:$0xff]   ;;  %v3374_v42 = vld [vmem:[%s6348_s6 + $0x65] sm:$0xff]  ;;  %v4922_v54 = vld [vmem:[%s6344_s2 + $0x310] sm:$0xff]  }
 0x17b   :  { %4420 = vmatpush3.bf16.msra.mxu0 %v4890_v45  ;;  %v2875_v45 = vpack.c.bf16 %v2871_v37, %v2870_v36  ;;  %v3256_v36 = vpack.c.bf16 %v3252_v60, %v3251_v59  ;;  %v3372_v37 = vld [vmem:[%s6348_s6 + $0x55] sm:$0xff] }
 0x17c   :  { %4429 = vmatprep.subr.bf16.mxu0 %v4892_v61 }
 0x17d   :  { %4596 = vmatpush3.bf16.msra.mxu1 %v4891_v55  ;;  %v4908_v55 = vld [vmem:[%s6344_s2 + $0x2a0] sm:$0xff]  }
 0x17e   :  { %4422 = vmatmul.mubr.msk.bf16.vlgmr.msra.gmra.mrb[68].mxu0 %vm428_vm2, %v1349_v4  ;;  %4605 = vmatprep.subr.bf16.mxu1 %v4893_v1  ;;  %v1600_v4 = vld [vmem:[%s6348_s6 + $0xc2] sm:$0xff] }
 0x17f   :  { %4425 = vmatprep.mubr.msk.bf16.mxu0 %vm428_vm2, %v1350_v47  ;;  %4430 = vmatpush3.bf16.msra.mxu0 %v4892_v61  ;;  %v1603_v61 = vpack.c.bf16 %v1597_v52, %v1596_v50  ;;  %v2998_v47 = vld [vmem:[%s6348_s6 + $0x44] sm:$0x3] }
 0x180   :  { %4598 = vmatmul.mubr.msk.bf16.vlgmr.msra.gmra.mrb[36].mxu1 %vm428_vm2, %v2746_v56  ;;  %4431 = vmatprep.subr.bf16.mxu0 %v4894_v7  ;;  %v1605_v56 = vpack.c.bf16 %v1601_v5, %v1600_v4  ;;  %v3503_v4 = vld [vmem:[%s6348_s6 + $0x2e] sm:$0xff]  ;;  %v3504_v5 = vld [vmem:[%s6348_s6 + $0x36] sm:$0xff] }
 0x181   :  { %4606 = vmatpush3.bf16.msra.mxu1 %v4893_v1  ;;  %4601 = vmatprep.mubr.msk.bf16.mxu1 %vm428_vm2, %v2747_v8  ;;  %v3000_v1 = vpack.c.bf16 %v2994_v57, %v2993_v0  ;;  %v3378_v57 = vld [vmem:[%s6348_s6 + $0x85] sm:$0xff] }
 0x182   :  { %4607 = vmatprep.subr.bf16.mxu1 %v4895_v48 }
 0x183   :  { %4432 = vmatpush3.bf16.msra.mxu0 %v4894_v7  ;;  %v2997_v7 = vld [vmem:[%s6348_s6 + $0x3c] sm:$0xff] }
 0x184   :  { %4433 = vmatprep.subr.bf16.mxu0 %v4896_v10  ;;  %v3002_v8 = vpack.c.bf16 %v2998_v47, %v2997_v7  ;;  %v3509_v47 = vpack.c.bf16 %v3504_v5, %v3503_v4 }
 0x185   :  { %4608 = vmatpush3.bf16.msra.mxu1 %v4895_v48  ;;  %v3119_v48 = vld [vmem:[%s6348_s6 + $0x5c] sm:$0xff] }
 0x186   :  { %4426 = vmatmul.mubr.msk.bf16.gmra.mrb[40].mxu0 %vm428_vm2, %v1351_v18  ;;  %4609 = vmatprep.subr.bf16.mxu1 %v4897_v15  ;;  %v3122_v18 = vld [vmem:[%s6348_s6 + $0x74] sm:$0xff] }
 0x187   :  { %4434 = vmatpush3.bf16.msra.mxu0 %v4896_v10  ;;  %4437 = vmatprep.mubr.msk.bf16.mxu0 %vm428_vm2, %v1475_v20  ;;  %v3118_v10 = vld [vmem:[%s6348_s6 + $0x54] sm:$0xff]  ;;  %v3128_v20 = vpack.c.bf16 %v3123_v16, %v3122_v18 }
 0x188   :  { %4602 = vmatmul.mubr.msk.bf16.gmra.mrb[4].mxu1 %vm428_vm2, %v2748_v21  ;;  %4435 = vmatprep.subr.bf16.mxu0 %v4898_v19  ;;  %v3126_v12 = vpack.c.bf16 %v3119_v48, %v3118_v10  ;;  %v4914_v21 = vld [vmem:[%s6344_s2 + $0x2d0] sm:$0xff]  }
 0x189   :  { %4610 = vmatpush3.bf16.msra.mxu1 %v4897_v15  ;;  %4613 = vmatprep.mubr.msk.bf16.mxu1 %vm428_vm2, %v2872_v23  ;;  %v3121_v15 = vld [vmem:[%s6348_s6 + $0x6c] sm:$0xff] }
 0x18a   :  { %4611 = vmatprep.subr.bf16.mxu1 %v4899_v22  ;;  %v3127_v17 = vpack.c.bf16 %v3121_v15, %v3120_v14  ;;  %v3125_v23 = vld [vmem:[%s6348_s6 + $0x8c] sm:$0x3] }
 0x18b   :  { %4436 = vmatpush3.bf16.msra.mxu0 %v4898_v19  ;;  %v4913_v19 = vld [vmem:[%s6344_s2 + $0x2c8] sm:$0xff]  }
 0x18c   :  { %4445 = vmatprep.subr.bf16.mxu0 %v4900_v24 }
 0x18d   :  { %4612 = vmatpush3.bf16.msra.mxu1 %v4899_v22  ;;  %v3124_v22 = vld [vmem:[%s6348_s6 + $0x84] sm:$0xff] }
 0x18e   :  { %4438 = vmatmul.mubr.msk.bf16.vlgmr.msra.gmra.mrb[72].mxu0 %vm428_vm2, %v1476_v28  ;;  %4621 = vmatprep.subr.bf16.mxu1 %v4901_v27  ;;  %v3129_v26 = vpack.c.bf16 %v3125_v23, %v3124_v22  ;;  %v3248_v28 = vld [vmem:[%s6348_s6 + $0x25] sm:$0xff] }
 0x18f   :  { %4441 = vmatprep.mubr.msk.bf16.mxu0 %vm428_vm2, %v1477_v31  ;;  %4446 = vmatpush3.bf16.msra.mxu0 %v4900_v24  ;;  %v3245_v24 = vld [vmem:[%s6348_s6 + $0xd] sm:$0xff]  ;;  %v3250_v31 = vld [vmem:[%s6348_s6 + $0x35] sm:$0xff] }
 0x190   :  { %4614 = vmatmul.mubr.msk.bf16.vlgmr.msra.gmra.mrb[40].mxu1 %vm428_vm2, %v2873_v32  ;;  %4447 = vmatprep.subr.bf16.mxu0 %v4902_v29  ;;  %v3253_v62 = vpack.c.bf16 %v3246_v25, %v3245_v24  ;;  %v3247_v32 = vld [vmem:[%s6348_s6 + $0x1d] sm:$0xff] }
 0x191   :  { %4622 = vmatpush3.bf16.msra.mxu1 %v4901_v27  ;;  %4617 = vmatprep.mubr.msk.bf16.mxu1 %vm428_vm2, %v2874_v34  ;;  %v4916_v27 = vld [vmem:[%s6344_s2 + $0x2e0] sm:$0xff]   ;;  %v4917_v34 = vld [vmem:[%s6344_s2 + $0x2e8] sm:$0xff]  }
 0x192   :  { %4623 = vmatprep.subr.bf16.mxu1 %v4903_v33 }
 0x193   :  { %4448 = vmatpush3.bf16.msra.mxu0 %v4902_v29  ;;  %v3249_v29 = vld [vmem:[%s6348_s6 + $0x2d] sm:$0xff] }
 0x194   :  { %4449 = vmatprep.subr.bf16.mxu0 %v4904_v35 }
 0x195   :  { %4624 = vmatpush3.bf16.msra.mxu1 %v4903_v33  ;;  %v3254_v33 = vpack.c.bf16 %v3248_v28, %v3247_v32 }
 0x196   :  { %4442 = vmatmul.mubr.msk.bf16.gmra.mrb[40].mxu0 %vm428_vm2, %v1478_v39  ;;  %4625 = vmatprep.subr.bf16.mxu1 %v4905_v9 }
 0x197   :  { %4450 = vmatpush3.bf16.msra.mxu0 %v4904_v35  ;;  %4453 = vmatprep.mubr.msk.bf16.mxu0 %vm428_vm2, %v1602_v44  ;;  %v3255_v35 = vpack.c.bf16 %v3250_v31, %v3249_v29  ;;  %v3377_v44 = vld [vmem:[%s6348_s6 + $0x7d] sm:$0xff] }
 0x198   :  { %4618 = vmatmul.mubr.msk.bf16.gmra.mrb[4].mxu1 %vm428_vm2, %v2875_v45  ;;  %4451 = vmatprep.subr.bf16.mxu0 %v4906_v43 }
 0x199   :  { %4626 = vmatpush3.bf16.msra.mxu1 %v4905_v9  ;;  %4629 = vmatprep.mubr.msk.bf16.mxu1 %vm428_vm2, %v2999_v49  ;;  %v3373_v9 = vld [vmem:[%s6348_s6 + $0x5d] sm:$0xff]  ;;  %v4921_v49 = vld [vmem:[%s6344_s2 + $0x308] sm:$0xff]  }
 0x19a   :  { %4627 = vmatprep.subr.bf16.mxu1 %v4907_v46  ;;  %v3380_v39 = vpack.c.bf16 %v3373_v9, %v3372_v37 }
 0x19b   :  { %4452 = vmatpush3.bf16.msra.mxu0 %v4906_v43  ;;  %v3375_v43 = vld [vmem:[%s6348_s6 + $0x6d] sm:$0xff] }
 0x19c   :  { %v3381_v45 = vpack.c.bf16 %v3375_v43, %v3374_v42 }
 0x19d   :  { %4628 = vmatpush3.bf16.msra.mxu1 %v4907_v46  ;;  %v3376_v46 = vld [vmem:[%s6348_s6 + $0x75] sm:$0xff] }
 0x19e   :  { %4454 = vmatmul.mubr.msk.bf16.vlgmr.msra.gmra.mrb[76].mxu0 %vm428_vm2, %v1603_v61  ;;  %4637 = vmatprep.subr.bf16.mxu1 %v4908_v55  ;;  %v3382_v50 = vpack.c.bf16 %v3377_v44, %v3376_v46  ;;  %v3379_v61 = vld [vmem:[%s6348_s6 + $0x8d] sm:$0x3] }
 0x19f   :  { %4457 = vmatprep.mubr.msk.bf16.mxu0 %vm428_vm2, %v1604_v51  ;;  %v3500_v51 = vld [vmem:[%s6348_s6 + $0x16] sm:$0xff]  ;;  %v3383_v0 = vpack.c.bf16 %v3379_v61, %v3378_v57 }
 0x1a0   :  { %4630 = vmatmul.mubr.msk.bf16.vlgmr.msra.gmra.mrb[44].mxu1 %vm428_vm2, %v3000_v1  ;;  %v4923_v1 = vld [vmem:[%s6344_s2 + $0x318] sm:$0xff]  }
 0x1a1   :  { %4638 = vmatpush3.bf16.msra.mxu1 %v4908_v55  ;;  %4633 = vmatprep.mubr.msk.bf16.mxu1 %vm428_vm2, %v3001_v3  ;;  %v3502_v3 = vld [vmem:[%s6348_s6 + $0x26] sm:$0xff] }
 0x1a2   :  { %4639 = vmatprep.subr.bf16.mxu1 %v4909_v2 }
 0x1a5   :  { %4640 = vmatpush3.bf16.msra.mxu1 %v4909_v2  ;;  %v3507_v2 = vpack.c.bf16 %v3500_v51, %v3499_v30 }
 0x1a6   :  { %4458 = vmatmul.mubr.msk.bf16.gmra.mrb[40].mxu0 %vm428_vm2, %v1605_v56  ;;  %4641 = vmatprep.subr.bf16.mxu1 %v4910_v6 }
 0x1a8   :  { %4634 = vmatmul.mubr.msk.bf16.gmra.mrb[4].mxu1 %vm428_vm2, %v3002_v8 }
 0x1a9   :  { %4642 = vmatpush3.bf16.msra.mxu1 %v4910_v6  ;;  %4645 = vmatprep.mubr.msk.bf16.mxu1 %vm428_vm2, %v3126_v12  ;;  %v3501_v6 = vld [vmem:[%s6348_s6 + $0x1e] sm:$0xff]  ;;  %v3506_v12 = vld [vmem:[%s6348_s6 + $0x46] sm:$0x3] }
 0x1aa   :  { %4643 = vmatprep.subr.bf16.mxu1 %v4911_v11  ;;  %v3508_v7 = vpack.c.bf16 %v3502_v3, %v3501_v6 }
 0x1ad   :  { %4644 = vmatpush3.bf16.msra.mxu1 %v4911_v11  ;;  %v3505_v11 = vld [vmem:[%s6348_s6 + $0x3e] sm:$0xff] }
 0x1ae   :  { %4653 = vmatprep.subr.bf16.mxu1 %v4912_v13 }
 0x1b0   :  { %4646 = vmatmul.mubr.msk.bf16.vlgmr.msra.gmra.mrb[48].mxu1 %vm428_vm2, %v3127_v17  ;;  %v3510_v17 = vpack.c.bf16 %v3506_v12, %v3505_v11 }
 0x1b1   :  { %4654 = vmatpush3.bf16.msra.mxu1 %v4912_v13  ;;  %4649 = vmatprep.mubr.msk.bf16.mxu1 %vm428_vm2, %v3128_v20 }
 0x1b2   :  { %4655 = vmatprep.subr.bf16.mxu1 %v4913_v19 }
 0x1b5   :  { %4656 = vmatpush3.bf16.msra.mxu1 %v4913_v19 }
 0x1b6   :  { %4657 = vmatprep.subr.bf16.mxu1 %v4914_v21 }
 0x1b8   :  { %4650 = vmatmul.mubr.msk.bf16.gmra.mrb[4].mxu1 %vm428_vm2, %v3129_v26 }
 0x1b9   :  { %4658 = vmatpush3.bf16.msra.mxu1 %v4914_v21  ;;  %4661 = vmatprep.mubr.msk.bf16.mxu1 %vm428_vm2, %v3253_v62 }
 0x1ba   :  { %4659 = vmatprep.subr.bf16.mxu1 %v4915_v41 }
 0x1bd   :  { %4660 = vmatpush3.bf16.msra.mxu1 %v4915_v41 }
 0x1be   :  { %4669 = vmatprep.subr.bf16.mxu1 %v4916_v27 }
 0x1c0   :  { %4662 = vmatmul.mubr.msk.bf16.vlgmr.msra.gmra.mrb[52].mxu1 %vm428_vm2, %v3254_v33 }
 0x1c1   :  { %4670 = vmatpush3.bf16.msra.mxu1 %v4916_v27  ;;  %4665 = vmatprep.mubr.msk.bf16.mxu1 %vm428_vm2, %v3255_v35 }
 0x1c2   :  { %4671 = vmatprep.subr.bf16.mxu1 %v4917_v34 }
 0x1c5   :  { %4672 = vmatpush3.bf16.msra.mxu1 %v4917_v34 }
 0x1c6   :  { %4673 = vmatprep.subr.bf16.mxu1 %v4918_v58 }
 0x1c8   :  { %4666 = vmatmul.mubr.msk.bf16.gmra.mrb[4].mxu1 %vm428_vm2, %v3256_v36 }
 0x1c9   :  { %4674 = vmatpush3.bf16.msra.mxu1 %v4918_v58  ;;  %4677 = vmatprep.mubr.msk.bf16.mxu1 %vm428_vm2, %v3380_v39 }
 0x1ca   :  { %4675 = vmatprep.subr.bf16.mxu1 %v4919_v38 }
 0x1cd   :  { %4676 = vmatpush3.bf16.msra.mxu1 %v4919_v38 }
 0x1ce   :  { %4685 = vmatprep.subr.bf16.mxu1 %v4920_v40 }
 0x1d0   :  { %4678 = vmatmul.mubr.msk.bf16.vlgmr.msra.gmra.mrb[56].mxu1 %vm428_vm2, %v3381_v45  ;;  %v6198_v52 = vpop.f32.mrb[0].mxu1 }
 0x1d1   :  { %4686 = vmatpush3.bf16.msra.mxu1 %v4920_v40  ;;  %4681 = vmatprep.mubr.msk.bf16.mxu1 %vm428_vm2, %v3382_v50  ;;  %v6201_v53 = vpop.f32.mrb[1].mxu1 }
 0x1d2   :  { %4687 = vmatprep.subr.bf16.mxu1 %v4921_v49  ;;  %v4472_v55 = vpop.f32.mrb[2].mxu1 }
 0x1d3   :  { %v6212_v63 = vpop.f32.mrb[3].mxu1 }
 0x1d5   :  { %4688 = vmatpush3.bf16.msra.mxu1 %v4921_v49 }
 0x1d6   :  { %4689 = vmatprep.subr.bf16.mxu1 %v4922_v54 }
 0x1d8   :  { %4682 = vmatmul.mubr.msk.bf16.gmra.mrb[4].mxu1 %vm428_vm2, %v3383_v0 }
 0x1d9   :  { %4690 = vmatpush3.bf16.msra.mxu1 %v4922_v54  ;;  %4693 = vmatprep.mubr.msk.bf16.mxu1 %vm428_vm2, %v3507_v2 }
 0x1da   :  { %4691 = vmatprep.subr.bf16.mxu1 %v4923_v1 }
 0x1dd   :  { %4692 = vmatpush3.bf16.msra.mxu1 %v4923_v1 }
 0x1e0   :  { %4694 = vmatmul.mubr.msk.bf16.vlgmr.msra.gmra.mrb[60].mxu1 %vm428_vm2, %v3508_v7  ;;  %v4311_v56 = vpop.f32.mrb[36].mxu0 }
 0x1e1   :  { %4697 = vmatprep.mubr.msk.bf16.mxu1 %vm428_vm2, %v3509_v47  ;;  %v575_v48 = vpop.f32.mrb[37].mxu0 }
 0x1e2   :  { %v4312_v8 = vpop.f32.mrb[38].mxu0 }
 0x1e3   :  { %v6239_v10 = vpop.f32.mrb[8].mxu1  ;;  %v578_v13 = vpop.f32.mrb[39].mxu0 }
 0x1e4   :  { %v6247_v14 = vpop.f32.mrb[9].mxu1 }
 0x1e5   :  { %v4488_v15 = vpop.f32.mrb[10].mxu1 }
 0x1e6   :  { %v6249_v16 = vpop.f32.mrb[11].mxu1 }
 0x1e8   :  { %4698 = vmatmul.mubr.msk.bf16.gmra.mrb[4].mxu1 %vm428_vm2, %v3510_v17 }
 0x1f0   :  { %v4327_v18 = vpop.f32.mrb[44].mxu0 }
 0x1f1   :  { %v684_v19 = vadd.f32 %v4327_v18, %v4311_v56  ;;  %v675_v20 = vpop.f32.mrb[45].mxu0 }
 0x1f2   :  { %v676_v21 = vadd.f32 %v675_v20, %v575_v48  ;;  %v4328_v22 = vpop.f32.mrb[46].mxu0 }
 0x1f3   :  { %v6252_v23 = vpop.f32.mrb[12].mxu1  ;;  %v678_v24 = vpop.f32.mrb[47].mxu0 }
 0x1f4   :  { %v6254_v25 = vpop.f32.mrb[13].mxu1  ;;  %v679_v26 = vadd.f32 %v678_v24, %v578_v13 }
 0x1f5   :  { %v4504_v41 = vpop.f32.mrb[14].mxu1 }
 0x1f6   :  { %v6256_v62 = vpop.f32.mrb[15].mxu1 }
 0x201   :  { %v4343_v27 = vpop.f32.mrb[48].mxu0 }
 0x202   :  { %v827_v28 = vadd.f32 %v4343_v27, %v684_v19  ;;  %v795_v29 = vpop.f32.mrb[49].mxu0 }
 0x203   :  { %v825_v31 = vadd.f32 %v795_v29, %v676_v21  ;;  %v4344_v32 = vpop.f32.mrb[50].mxu0  ;;  %v6258_v33 = vpop.f32.mrb[16].mxu1 }
 0x204   :  { %v798_v34 = vpop.f32.mrb[51].mxu0  ;;  %v6260_v35 = vpop.f32.mrb[17].mxu1 }
 0x205   :  { %v826_v58 = vadd.f32 %v798_v34, %v679_v26  ;;  %v4520_v59 = vpop.f32.mrb[18].mxu1 }
 0x206   :  { %v6262_v60 = vpop.f32.mrb[19].mxu1 }
 0x211   :  { %v4359_v9 = vpop.f32.mrb[52].mxu0 }
 0x212   :  { %v954_v36 = vadd.f32 %v4359_v9, %v827_v28  ;;  %v922_v37 = vpop.f32.mrb[53].mxu0 }
 0x213   :  { %v952_v38 = vadd.f32 %v922_v37, %v825_v31  ;;  %v4360_v39 = vpop.f32.mrb[54].mxu0  ;;  %v6264_v40 = vpop.f32.mrb[20].mxu1 }
 0x214   :  { %v925_v42 = vpop.f32.mrb[55].mxu0  ;;  %v6266_v43 = vpop.f32.mrb[21].mxu1 }
 0x215   :  { %v953_v44 = vadd.f32 %v925_v42, %v826_v58  ;;  %v4536_v45 = vpop.f32.mrb[22].mxu1 }
 0x216   :  { %v6268_v46 = vpop.f32.mrb[23].mxu1 }
 0x221   :  { %v4375_v49 = vpop.f32.mrb[56].mxu0 }
 0x222   :  { %v1081_v50 = vadd.f32 %v4375_v49, %v954_v36  ;;  %v1049_v54 = vpop.f32.mrb[57].mxu0 }
 0x223   :  { %v1079_v55 = vadd.f32 %v1049_v54, %v952_v38  ;;  %v4376_v57 = vpop.f32.mrb[58].mxu0  ;;  %v6270_v61 = vpop.f32.mrb[24].mxu1 }
 0x224   :  { %v1052_v30 = vpop.f32.mrb[59].mxu0  ;;  %v6272_v51 = vpop.f32.mrb[25].mxu1 }
 0x225   :  { %v1080_v0 = vadd.f32 %v1052_v30, %v953_v44  ;;  %v4552_v1 = vpop.f32.mrb[26].mxu1 }
 0x226   :  { %v6274_v2 = vpop.f32.mrb[27].mxu1 }
 0x231   :  { %v4391_v3 = vpop.f32.mrb[60].mxu0 }
 0x232   :  { %v1208_v4 = vadd.f32 %v4391_v3, %v1081_v50  ;;  %v1176_v5 = vpop.f32.mrb[61].mxu0 }
 0x233   :  { %v1206_v6 = vadd.f32 %v1176_v5, %v1079_v55  ;;  %v4392_v7 = vpop.f32.mrb[62].mxu0  ;;  %v6276_v47 = vpop.f32.mrb[28].mxu1 }
 0x234   :  { %v1179_v56 = vpop.f32.mrb[63].mxu0  ;;  %v6278_v48 = vpop.f32.mrb[29].mxu1 }
 0x235   :  { %v1207_v8 = vadd.f32 %v1179_v56, %v1080_v0  ;;  %v4568_v11 = vpop.f32.mrb[30].mxu1 }
 0x236   :  { %v6280_v12 = vpop.f32.mrb[31].mxu1 }
 0x241   :  { %v4407_v13 = vpop.f32.mrb[64].mxu0 }
 0x242   :  { %v1335_v15 = vadd.f32 %v4407_v13, %v1208_v4  ;;  %v1303_v17 = vpop.f32.mrb[65].mxu0 }
 0x243   :  { %v1333_v18 = vadd.f32 %v1303_v17, %v1206_v6  ;;  %v4408_v19 = vpop.f32.mrb[66].mxu0  ;;  %v6282_v20 = vpop.f32.mrb[32].mxu1 }
 0x244   :  { %v1306_v21 = vpop.f32.mrb[67].mxu0  ;;  %v2700_v22 = vpop.f32.mrb[33].mxu1 }
 0x245   :  { %v1334_v24 = vadd.f32 %v1306_v21, %v1207_v8  ;;  %v4584_v26 = vpop.f32.mrb[34].mxu1 }
 0x246   :  { %v6284_v41 = vpop.f32.mrb[35].mxu1 }
 0x251   :  { %v4423_v27 = vpop.f32.mrb[68].mxu0 }
 0x252   :  { %v1462_v28 = vadd.f32 %v4423_v27, %v1335_v15  ;;  %v1430_v29 = vpop.f32.mrb[69].mxu0 }
 0x253   :  { %v1460_v31 = vadd.f32 %v1430_v29, %v1333_v18  ;;  %v4424_v32 = vpop.f32.mrb[70].mxu0  ;;  %v4599_v34 = vpop.f32.mrb[36].mxu1 }
 0x254   :  { %v1433_v58 = vpop.f32.mrb[71].mxu0  ;;  %v2827_v59 = vpop.f32.mrb[37].mxu1 }
 0x255   :  { %v1461_v9 = vadd.f32 %v1433_v58, %v1334_v24  ;;  %v4600_v36 = vpop.f32.mrb[38].mxu1 }
 0x256   :  { %v2830_v37 = vpop.f32.mrb[39].mxu1 }
 0x261   :  { %v4439_v38 = vpop.f32.mrb[72].mxu0 }
 0x262   :  { %v1589_v39 = vadd.f32 %v4439_v38, %v1462_v28  ;;  %v1557_v42 = vpop.f32.mrb[73].mxu0 }
 0x263   :  { %v1587_v44 = vadd.f32 %v1557_v42, %v1460_v31  ;;  %v4440_v45 = vpop.f32.mrb[74].mxu0  ;;  %v4615_v49 = vpop.f32.mrb[40].mxu1 }
 0x264   :  { %v1560_v50 = vpop.f32.mrb[75].mxu0  ;;  %v2954_v54 = vpop.f32.mrb[41].mxu1 }
 0x265   :  { %v1588_v55 = vadd.f32 %v1560_v50, %v1461_v9  ;;  %v4616_v57 = vpop.f32.mrb[42].mxu1 }
 0x266   :  { %v2957_v30 = vpop.f32.mrb[43].mxu1 }
 0x271   :  { %v4455_v0 = vpop.f32.mrb[76].mxu0 }
 0x272   :  { %v1716_v1 = vadd.f32 %v4455_v0, %v1589_v39  ;;  %v1684_v3 = vpop.f32.mrb[77].mxu0 }
 0x273   :  { %v1714_v4 = vadd.f32 %v1684_v3, %v1587_v44  ;;  %v4456_v5 = vpop.f32.mrb[78].mxu0  ;;  %v4631_v6 = vpop.f32.mrb[44].mxu1 }
 0x274   :  { %v1843_v7 = vadd.f32 %v6198_v52, %v1716_v1  ;;  %v1687_v56 = vpop.f32.mrb[79].mxu0  ;;  %v3081_v8 = vpop.f32.mrb[45].mxu1 }
 0x275   :  { %v1841_v11 = vadd.f32 %v6201_v53, %v1714_v4  ;;  %v1715_v13 = vadd.f32 %v1687_v56, %v1588_v55  ;;  %v4632_v15 = vpop.f32.mrb[46].mxu1 }
 0x276   :  { %v1970_v17 = vadd.f32 %v6239_v10, %v1843_v7  ;;  %v3084_v18 = vpop.f32.mrb[47].mxu1 }
 0x277   :  { %v1968_v19 = vadd.f32 %v6247_v14, %v1841_v11  ;;  %v1842_v21 = vadd.f32 %v6212_v63, %v1715_v13 }
 0x278   :  { %v2097_v24 = vadd.f32 %v6252_v23, %v1970_v17 }
 0x279   :  { %v2095_v26 = vadd.f32 %v6254_v25, %v1968_v19  ;;  %v1969_v27 = vadd.f32 %v6249_v16, %v1842_v21  ;;  %v6294_v52 = vpop.f32.mrb[40].mxu0 }
 0x27a   :  { %v2224_v28 = vadd.f32 %v6258_v33, %v2097_v24  ;;  %v6297_v53 = vpop.f32.mrb[41].mxu0 }
 0x27b   :  { %v2222_v29 = vadd.f32 %v6260_v35, %v2095_v26  ;;  %v2096_v10 = vadd.f32 %v6256_v62, %v1969_v27  ;;  %v6301_v31 = vpop.f32.mrb[42].mxu0 }
 0x27c   :  { %v2351_v63 = vadd.f32 %v6264_v40, %v2224_v28  ;;  %v6304_v14 = vpop.f32.mrb[43].mxu0 }
 0x27d   :  { %v2349_v23 = vadd.f32 %v6266_v43, %v2222_v29  ;;  %v2223_v16 = vadd.f32 %v6262_v60, %v2096_v10 }
 0x27e   :  { %v2478_v25 = vadd.f32 %v6270_v61, %v2351_v63 }
 0x27f   :  { %v2350_v33 = vadd.f32 %v6268_v46, %v2223_v16  ;;  %v2476_v32 = vadd.f32 %v6272_v51, %v2349_v23 }
 0x280   :  { %v2605_v35 = vadd.f32 %v6276_v47, %v2478_v25 }
 0x281   :  { %v2603_v62 = vadd.f32 %v6278_v48, %v2476_v32  ;;  %v2477_v58 = vadd.f32 %v6274_v2, %v2350_v33 }
 0x282   :  { %v2732_v40 = vadd.f32 %v6282_v20, %v2605_v35 }
 0x283   :  { %v2730_v9 = vadd.f32 %v2700_v22, %v2603_v62  ;;  %v2604_v36 = vadd.f32 %v6280_v12, %v2477_v58  ;;  %v4647_v43 = vpop.f32.mrb[48].mxu1 }
 0x284   :  { %v2859_v38 = vadd.f32 %v4599_v34, %v2732_v40  ;;  %v3208_v60 = vpop.f32.mrb[49].mxu1 }
 0x285   :  { %v2857_v39 = vadd.f32 %v2827_v59, %v2730_v9  ;;  %v2731_v61 = vadd.f32 %v6284_v41, %v2604_v36  ;;  %v4648_v46 = vpop.f32.mrb[50].mxu1 }
 0x286   :  { %v2986_v42 = vadd.f32 %v4615_v49, %v2859_v38  ;;  %v3211_v51 = vpop.f32.mrb[51].mxu1 }
 0x287   :  { %v2984_v44 = vadd.f32 %v2954_v54, %v2857_v39  ;;  %v2858_v47 = vadd.f32 %v2830_v37, %v2731_v61 }
 0x288   :  { %v3113_v45 = vadd.f32 %v4631_v6, %v2986_v42 }
 0x289   :  { %v3111_v48 = vadd.f32 %v3081_v8, %v2984_v44  ;;  %v2985_v50 = vadd.f32 %v2957_v30, %v2858_v47  ;;  %v4026_v30 = vld [vmem:[%s6345_s3] ss:$0 sm:$0xff] }
 0x28a   :  { %v3240_v2 = vadd.f32 %v4647_v43, %v3113_v45 }
 0x28b   :  { %v3112_v55 = vadd.f32 %v3084_v18, %v2985_v50  ;;  %v3238_v20 = vadd.f32 %v3208_v60, %v3111_v48 }
 0x28d   :  { %v3239_v22 = vadd.f32 %v3211_v51, %v3112_v55 }
 0x293   :  { %v4663_v57 = vpop.f32.mrb[52].mxu1 }
 0x294   :  { %v3367_v12 = vadd.f32 %v4663_v57, %v3240_v2  ;;  %v3335_v0 = vpop.f32.mrb[53].mxu1 }
 0x295   :  { %v3365_v34 = vadd.f32 %v3335_v0, %v3238_v20  ;;  %v4664_v1 = vpop.f32.mrb[54].mxu1 }
 0x296   :  { %v3338_v59 = vpop.f32.mrb[55].mxu1 }
 0x297   :  { %v3366_v3 = vadd.f32 %v3338_v59, %v3239_v22 }
 0x2a3   :  { %v4679_v41 = vpop.f32.mrb[56].mxu1 }
 0x2a4   :  { %v3494_v4 = vadd.f32 %v4679_v41, %v3367_v12  ;;  %v3462_v49 = vpop.f32.mrb[57].mxu1 }
 0x2a5   :  { %v3492_v5 = vadd.f32 %v3462_v49, %v3365_v34  ;;  %v4680_v54 = vpop.f32.mrb[58].mxu1 }
 0x2a6   :  { %v3465_v37 = vpop.f32.mrb[59].mxu1 }
 0x2a7   :  { %v3493_v6 = vadd.f32 %v3465_v37, %v3366_v3  ;;  %v3739_v3 = vlaneseq }
 0x2a9   :  { %v3740_v41 = vshrl.u32 %v3739_v3, 7 }
 0x2ab   :  { %v3741_v49 = vsub.s32 0, %v3740_v41 }
 0x2b3   :  { %v4695_v7 = vpop.f32.mrb[60].mxu1 }
 0x2b4   :  { %v3621_v56 = vadd.f32 %v4695_v7, %v3494_v4  ;;  %v3589_v8 = vpop.f32.mrb[61].mxu1  ;;  %v3737_v4 = vld [vmem:[%s6346_s4] sm:$0x1]  ;;  %s4926_s4 = scalar_lea.vmem %s3770_s24, 512 }
 0x2b5   :  { %v3619_v11 = vadd.f32 %v3589_v8, %v3492_v5  ;;  %v4696_v13 = vpop.f32.mrb[62].mxu1  ;;  %p4927_p0 = scmp.ne.s32.totalorder %s3770_s24, %s4926_s4  ;;  %p4932_p2 = scmp.lt.s32.totalorder %s4926_s4, %s4926_s4 }
 0x2b6   :  { %v3662_v15 = vadd.f32 %v4026_v30, %v3621_v56  ;;  %v3592_v17 = vpop.f32.mrb[63].mxu1 }
 0x2b7   :  { %v3633_v18 = vadd.f32 %v4026_v30, %v3619_v11  ;;  %v3620_v19 = vadd.f32 %v3592_v17, %v3493_v6  ;;  %v4031_v6 = vld [vmem:[%s6347_s5] ss:$0 sm:$0xff]  ;;  %p4933_p3 = por %p4932_p2, %p4931_p1 }
 0x2b8   :  { %3663 = vst [vmem:[#allocation2 + $0xa] sm:$0x3c] %v3662_v15 }
 0x2b9   :  { %3634 = vst [vmem:[#allocation2] sm:$0xf] %v3633_v18  ;;  %3644 = vst [vmem:[#allocation2 - $0x2] sm:$0xc0] %v3633_v18  ;;  %v3643_v21 = vadd.f32 %v4026_v30, %v3620_v19  ;;  %p4934_p4 = pnand %p4933_p3, %p4927_p0 }
 0x2bb   :  { %3645 = vst [vmem:[#allocation2 + $0x6] sm:$0x3] %v3643_v21  ;;  %3654 = vst [vmem:[#allocation2 + $0x4] sm:$0xf0] %v3643_v21  ;;  %v4699_v24 = vpop.f32.mrb[4].mxu1 }
 0x2bc   :  { %v4701_v26 = vadd.f32 %v4699_v24, %v6294_v52  ;;  %v3604_v27 = vpop.f32.mrb[5].mxu1 }
 0x2bd   :  { %v4702_v28 = vadd.f32 %v3604_v27, %v6297_v53  ;;  %v4700_v29 = vpop.f32.mrb[6].mxu1 }
 0x2be   :  { %v3689_v10 = vadd.f32 %v4701_v26, %v4026_v30  ;;  %v4703_v63 = vadd.f32 %v4700_v29, %v6301_v31  ;;  %v3607_v23 = vpop.f32.mrb[7].mxu1 }
 0x2bf   :  { %v3671_v16 = vadd.f32 %v4702_v28, %v4026_v30  ;;  %v4704_v25 = vadd.f32 %v3607_v23, %v6304_v14 }
 0x2c0   :  { %3690 = vst [vmem:[#allocation2 + $0x18] sm:$0xf] %v3689_v10  ;;  %3700 = vst [vmem:[#allocation2 + $0x16] sm:$0xc0] %v3689_v10  ;;  %v3699_v33 = vadd.f32 %v4703_v63, %v4026_v30 }
 0x2c1   :  { %3672 = vst [vmem:[#allocation2 + $0xc] sm:$0xf0] %v3671_v16  ;;  %v3680_v32 = vadd.f32 %v4704_v25, %v4026_v30 }
 0x2c2   :  { %3701 = vst [vmem:[#allocation2 + $0x1e] sm:$0x3] %v3699_v33  ;;  %v3702_v35 = vld [vmem:[#allocation2] sm:$0xff]  ;;  %v3703_v52 = vld [vmem:[#allocation2 + $0x8] sm:$0xff] }
 0x2c3   :  { %3681 = vst [vmem:[#allocation2 + $0x12] sm:$0x3c] %v3680_v32  ;;  %v3706_v62 = vadd.f32 %v3703_v52, %v3702_v35 }
 0x2c9   :  { %v3705_v40 = vld [vmem:[#allocation2 + $0x18] sm:$0xff] }
 0x2ca   :  { %v3704_v58 = vld [vmem:[#allocation2 + $0x10] sm:$0xff] }
 0x2cb   :  { %v3707_v53 = vadd.f32 %v3706_v62, %v3704_v58 }
 0x2cd   :  { %v3708_v9 = vadd.f32 %v3707_v53, %v3705_v40 }
 0x2cf   :  { %v3709_v36 = vrot.slane %v3708_v9, 4 }
 0x2d1   :  { %v3710_v31 = vadd.f32 %v3709_v36, %v3708_v9 }
 0x2d3   :  { %v3711_v43 = vrot.slane %v3710_v31, 2 }
 0x2d5   :  { %v3712_v38 = vadd.f32 %v3711_v43, %v3710_v31 }
 0x2d7   :  { %v3713_v60 = vrot.slane %v3712_v38, 1 }
 0x2d9   :  { %v3714_v14 = vadd.f32 %v3713_v60, %v3712_v38 }
 0x2db   :  { %v3716_v39 = vmul.f32 0.03125, %v3714_v14 }
 0x2dd   :  { %v3717_v61 = vsub.f32 %v3702_v35, %v3716_v39  ;;  %v3718_v46 = vsub.f32 %v3703_v52, %v3716_v39  ;;  %v3719_v42 = vsub.f32 %v3704_v58, %v3716_v39  ;;  %v3720_v51 = vsub.f32 %v3705_v40, %v3716_v39 }
 0x2df   :  { %v3721_v44 = vmul.f32 %v3717_v61, %v3717_v61  ;;  %v3722_v47 = vmul.f32 %v3718_v46, %v3718_v46  ;;  %v3723_v45 = vmul.f32 %v3719_v42, %v3719_v42  ;;  %v3724_v50 = vmul.f32 %v3720_v51, %v3720_v51 }
 0x2e1   :  { %v3725_v48 = vadd.f32 %v3722_v47, %v3721_v44 }
 0x2e3   :  { %v3726_v2 = vadd.f32 %v3725_v48, %v3723_v45 }
 0x2e5   :  { %v3727_v55 = vadd.f32 %v3726_v2, %v3724_v50 }
 0x2e7   :  { %v3728_v20 = vrot.slane %v3727_v55, 4 }
 0x2e9   :  { %v3729_v22 = vadd.f32 %v3728_v20, %v3727_v55 }
 0x2eb   :  { %v3730_v57 = vrot.slane %v3729_v22, 2 }
 0x2ed   :  { %v3731_v12 = vadd.f32 %v3730_v57, %v3729_v22 }
 0x2ef   :  { %v3732_v0 = vrot.slane %v3731_v12, 1 }
 0x2f1   :  { %v3733_v34 = vadd.f32 %v3732_v0, %v3731_v12 }
 0x2f3   :  { %v3734_v1 = vmul.f32 0.03125, %v3733_v34 }
 0x2f5   :  { %v3735_v59 = vadd.f32 1e-05, %v3734_v1 }
 0x2f7   :  { %4924 = vrsqrt.f32 %v3735_v59 }
 0x301   :  { %v4925_v5 = vpop.eup %4924 }
 0x302   :  { %v3738_v54 = vmul.f32 %v4925_v5, %v3737_v4 }
 0x304   :  { %v3742_v37 = vrot.slane %v3738_v54, %v3741_v49 }
 0x306   :  { %v3743_v7 = vmul.f32 %v3742_v37, %v3717_v61  ;;  %v3744_v30 = vmul.f32 %v3742_v37, %v3718_v46  ;;  %v3745_v56 = vmul.f32 %v3742_v37, %v3719_v42  ;;  %v3746_v8 = vmul.f32 %v3742_v37, %v3720_v51 }
 0x308   :  { %v3754_v11 = vadd.f32 %v4031_v6, %v3743_v7  ;;  %v3755_v13 = vadd.f32 %v4031_v6, %v3744_v30  ;;  %v3756_v15 = vadd.f32 %v4031_v6, %v3745_v56  ;;  %v3757_v17 = vadd.f32 %v4031_v6, %v3746_v8 }
 0x30a   :  { %3760 = vst [vmem:[#allocation2 + $0x10] sm:$0xff] %v3756_v15  ;;  %3758 = vst [vmem:[#allocation2] sm:$0xff] %v3754_v11 }
 0x30b   :  { %3759 = vst [vmem:[#allocation2 + $0x8] sm:$0xff] %v3755_v13  ;;  %3761 = vst [vmem:[#allocation2 + $0x18] sm:$0xff] %v3757_v17 }
 0x30c   :  { %4937 = shalt.err (!%p4934_p4)
}
 0x30d   :  { %s4938_s26 = scalar_lea.hbm %s6349_s7, 512 }
 0x30e   :  { %p4939_p5 = scmp.ne.s32.totalorder %s6349_s7, %s4938_s26  ;;  %p4942_p6 = scmp.lt.u32.totalorder %s4938_s26, %s6349_s7 }
 0x310   :  { %p4944_p7 = pnand %p4942_p6, %p4939_p5 }
 0x312   :  { %4947 = shalt.err (!%p4944_p7)
}
 0x313   :  { %s4951_s30 = smov 128   ;;  %s4952_s8 = smov 8  }
 0x314   :  { %3775 = dma.vmem_to_hbm [thread:$0]  %s3770_s24, 512, %s6349_s7, [#allocation3], %s4951_s30, %s4951_s30, %s4952_s8  }
 0x315   :  { %4948 = dma.done.wait [#allocation3], 512  }
 0x316   :  { %4949 = vsyncadd [#allocation3], 4294966784 }
 0x317   :  { %3781 = vsyncpa [#allocation3], 1 }

</bundles_post_ra>
